<compile_context>
chip_gen: v7x
topology: tpu7x:2x2x1
jax: 0.10.0
libtpu: 0.0.40
codegen_flags: <defaults>
</compile_context>

<pallas_src>
import functools
import math

import jax
import jax.numpy as jnp
from jax.experimental import pallas as pl
from jax.experimental.pallas import tpu as pltpu

MATMUL_DTYPE = jnp.bfloat16     # jnp.float32 -> exact f32 numerics
SPIKE_DTYPE = jnp.bfloat16      # spikes are exactly 0/1 -> lossless, half the bytes
MAX_TIME_CHUNK = 8              # max time steps fused per grid invocation


def _tpu_config():
    """Per-generation VMEM budget / megacore split (v7x: 64 MiB VMEM, 2 TCs;
    v5e/v6e: 128 MiB VMEM, 1 TC). Conservative fallback if detection fails."""
    vmem_cap = None
    try:
        info = pltpu.get_tpu_info()
        vmem_cap = int(getattr(info, "vmem_capacity_bytes", 0)) or None
    except Exception:
        vmem_cap = None
    kind = ""
    try:
        kind = jax.devices()[0].device_kind.lower()
    except Exception:
        pass
    is_v7 = "v7" in kind
    if vmem_cap is None:
        # unknown part: stay inside every generation's default scoped VMEM
        return {"vmem_limit": 32 << 20, "chunk_budget": 4 << 20,
                "n_cores": 2 if is_v7 else 1}
    if is_v7 or vmem_cap <= (80 << 20):
        # v7x: 64 MiB VMEM per core, 2 TensorCores -> split the lane dim
        return {"vmem_limit": 40 << 20, "chunk_budget": 6 << 20, "n_cores": 2}
    # v5e / v6e: 128 MiB physical VMEM, single TensorCore -> no split, big chunks
    return {"vmem_limit": 64 << 20, "chunk_budget": 14 << 20, "n_cores": 1}


def _pick_time_chunk(T, per_step_bytes, row_mult, budget):
    """Largest time chunk that (a) is a multiple of row_mult so (tc*Cout, Nb)
    output tiles are full-sublane, (b) fits the double-buffered byte budget,
    (c) doesn't pad past a single chunk of the real sequence."""
    best = row_mult
    c = row_mult
    while c <= MAX_TIME_CHUNK:
        if 2 * c * per_step_bytes <= budget:
            best = c
        c += row_mult
    cap = ((T + row_mult - 1) // row_mult) * row_mult
    return max(row_mult, min(best, cap))


# ----------------------------------------------------------------------------
# Fused conv (single quadrant-concatenated matmul) + bias + 2x2 max-pool + LIF
# ----------------------------------------------------------------------------
def _conv_pool_lif_kernel(p_ref, w_ref, b_ref, spk_ref, mem_ref, mem_state,
                          *, n_t, n_cols, beta, threshold):
    t = pl.program_id(1)

    @pl.when(t == 0)
    def _():                                  # lif.init_leaky(): zero membrane
        mem_state[...] = jnp.zeros_like(mem_state)

    w = w_ref[...]
    cout = w.shape[0]
    bias = jnp.broadcast_to(b_ref[...], (cout, n_cols))   # hoisted out of the loop
    mem = mem_state[...]
    for i in range(n_t):                      # static time chunk, fully unrolled
        # ONE matmul over the 4 lane-concatenated pooling quadrants ...
        c = jnp.dot(w, p_ref[i], preferred_element_type=jnp.float32)  # (Cout, 4*Nb)
        # ... fused 2x2 max-pool over the lane-aligned quadrant slices
        cur = jnp.maximum(
            jnp.maximum(c[:, 0 * n_cols:1 * n_cols], c[:, 1 * n_cols:2 * n_cols]),
            jnp.maximum(c[:, 2 * n_cols:3 * n_cols], c[:, 3 * n_cols:4 * n_cols]),
        ) + bias                               # bias per-channel: max(c)+b == max(c+b)
        reset = jnp.where(mem > threshold, threshold, 0.0)
        mem = beta * mem + cur - reset
        spk = jnp.where(mem > threshold, 1.0, 0.0)
        spk_ref[pl.ds(i * cout, cout), :] = spk.astype(spk_ref.dtype)
        mem_ref[pl.ds(i * cout, cout), :] = mem
    mem_state[...] = mem


def conv_pool_lif_layer(x_cl, w_mat, bias, K, beta, threshold, cfg):
    """x_cl: (T, B, H, W, Cin) channels-last activation.
       w_mat: (Cout, K*K*Cin), feature order (kh, kw, ci).
       Returns spk (bf16), mem (f32) of shape (T, Cout, B*Hp*Wp)."""
    T, B, H, W, Cin = x_cl.shape
    Cout, KKC = w_mat.shape
    Hp, Wp = (H - K + 1) // 2, (W - K + 1) // 2
    N = B * Hp * Wp

    n_split = 2 if (cfg["n_cores"] > 1 and N % (2 * 128) == 0) else 1
    Nb = N // n_split

    # wrapper-side im2col, then lane-concatenate the 4 pooling quadrants so the
    # kernel needs one DMA + one matmul per time step
    quads = _im2col_pooled_T(x_cl.astype(MATMUL_DTYPE), K)        # 4 x (T, KKC, N)
    patches = jnp.stack([q.reshape(T, KKC, n_split, Nb) for q in quads], axis=3)
    patches = patches.reshape(T, KKC, n_split * 4 * Nb)

    row_mult = 8 // math.gcd(8, Cout)          # full-sublane output tiles
    spk_isz = jnp.dtype(SPIKE_DTYPE).itemsize
    per_step_bytes = (KKC * 4 * Nb * patches.dtype.itemsize + Cout * Nb * (spk_isz + 4))
    tc = _pick_time_chunk(T, per_step_bytes, row_mult, cfg["chunk_budget"])
    T_pad = ((T + tc - 1) // tc) * tc
    if T_pad != T:                             # pad tail steps (discarded later)
        patches = jnp.pad(patches, ((0, T_pad - T), (0, 0), (0, 0)))

    grid = (n_split, T_pad // tc)
    p_spec = pl.BlockSpec((tc, KKC, 4 * Nb), lambda j, t: (t, 0, j))
    w_spec = pl.BlockSpec((Cout, KKC), lambda j, t: (0, 0))
    b_spec = pl.BlockSpec((Cout, 1), lambda j, t: (0, 0))
    o_spec = pl.BlockSpec((tc * Cout, Nb), lambda j, t: (t, j))

    kernel = functools.partial(_conv_pool_lif_kernel, n_t=tc, n_cols=Nb,
                               beta=float(beta), threshold=float(threshold))
    spk, mem = pl.pallas_call(
        kernel,
        out_shape=(jax.ShapeDtypeStruct((T_pad * Cout, N), SPIKE_DTYPE),
                   jax.ShapeDtypeStruct((T_pad * Cout, N), jnp.float32)),
        grid_spec=pltpu.PrefetchScalarGridSpec(
            num_scalar_prefetch=0,
            grid=grid,
            in_specs=[p_spec, w_spec, b_spec],
            out_specs=(o_spec, o_spec),
            scratch_shapes=[pltpu.VMEM((Cout, Nb), jnp.float32)],
        ),
        compiler_params=pltpu.CompilerParams(
            dimension_semantics=("parallel", "arbitrary"),
            vmem_limit_bytes=cfg["vmem_limit"]),
    )(patches, w_mat.astype(MATMUL_DTYPE),
      bias.reshape(Cout, 1).astype(jnp.float32))

    spk = spk[:T * Cout].reshape(T, Cout, N)
    mem = mem[:T * Cout].reshape(T, Cout, N)
    return spk, mem


# ----------------------------------------------------------------------------
# Fused Linear + LIF time scan
# ----------------------------------------------------------------------------
def _fc_lif_kernel(x_ref, w_ref, b_ref, spk_ref, mem_ref, mem_state,
                   *, n_t, n_cols, beta, threshold):
    t = pl.program_id(1)

    @pl.when(t == 0)
    def _():
        mem_state[...] = jnp.zeros_like(mem_state)

    w = w_ref[...]
    out_dim = w.shape[0]
    bias = jnp.broadcast_to(b_ref[...], (out_dim, n_cols))   # hoisted
    mem = mem_state[...]
    for i in range(n_t):
        cur = jnp.dot(w, x_ref[i], preferred_element_type=jnp.float32) + bias
        reset = jnp.where(mem > threshold, threshold, 0.0)
        mem = beta * mem + cur - reset
        spk = jnp.where(mem > threshold, 1.0, 0.0)
        spk_ref[pl.ds(i * out_dim, out_dim), :] = spk.astype(spk_ref.dtype)
        mem_ref[pl.ds(i * out_dim, out_dim), :] = mem
    mem_state[...] = mem


def fc_lif_layer(x, w, bias, beta, threshold, cfg):
    """x: (T, F, B) transposed fc input; w: (O, F).  Returns spk (bf16), mem
    (f32) of shape (T, O, B)."""
    T, F, B = x.shape
    O = w.shape[0]
    x = x.astype(MATMUL_DTYPE)

    n_split = 2 if (cfg["n_cores"] > 1 and B % (2 * 128) == 0) else 1
    Bb = B // n_split

    row_mult = 8 // math.gcd(8, O)
    spk_isz = jnp.dtype(SPIKE_DTYPE).itemsize
    per_step_bytes = F * Bb * x.dtype.itemsize + O * Bb * (spk_isz + 4)
    tc = _pick_time_chunk(T, per_step_bytes, row_mult, cfg["chunk_budget"])
    T_pad = ((T + tc - 1) // tc) * tc
    if T_pad != T:
        x = jnp.pad(x, ((0, T_pad - T), (0, 0), (0, 0)))

    grid = (n_split, T_pad // tc)
    x_spec = pl.BlockSpec((tc, F, Bb), lambda j, t: (t, 0, j))
    w_spec = pl.BlockSpec((O, F), lambda j, t: (0, 0))
    b_spec = pl.BlockSpec((O, 1), lambda j, t: (0, 0))
    o_spec = pl.BlockSpec((tc * O, Bb), lambda j, t: (t, j))

    kernel = functools.partial(_fc_lif_kernel, n_t=tc, n_cols=Bb,
                               beta=float(beta), threshold=float(threshold))
    spk, mem = pl.pallas_call(
        kernel,
        out_shape=(jax.ShapeDtypeStruct((T_pad * O, B), SPIKE_DTYPE),
                   jax.ShapeDtypeStruct((T_pad * O, B), jnp.float32)),
        grid_spec=pltpu.PrefetchScalarGridSpec(
            num_scalar_prefetch=0,
            grid=grid,
            in_specs=[x_spec, w_spec, b_spec],
            out_specs=(o_spec, o_spec),
            scratch_shapes=[pltpu.VMEM((O, Bb), jnp.float32)],
        ),
        compiler_params=pltpu.CompilerParams(
            dimension_semantics=("parallel", "arbitrary"),
            vmem_limit_bytes=cfg["vmem_limit"]),
    )(x, w.astype(MATMUL_DTYPE), bias.reshape(O, 1).astype(jnp.float32))

    spk = spk[:T * O].reshape(T, O, B)
    mem = mem[:T * O].reshape(T, O, B)
    return spk, mem


# ----------------------------------------------------------------------------
# Wrapper-side im2col, built per 2x2-pooling quadrant (pure layout glue)
# ----------------------------------------------------------------------------
def _im2col_pooled_T(x, K):
    """x: (T, B, H, W, C).  Returns 4 quadrant patch arrays, each
    (T, K*K*C, B*Hp*Wp) with feature order (kh, kw, c) and position order
    (b, hp, wp).  Quadrant q = (dh, dw) is the conv position (2hp+dh, 2wp+dw)
    inside the 2x2 max-pool window (hp, wp)."""
    T, B, H, W, C = x.shape
    Ho, Wo = H - K + 1, W - K + 1
    Hp, Wp = Ho // 2, Wo // 2
    quads = []
    for dh in range(2):
        for dw in range(2):
            cols = []
            for kh in range(K):
                for kw in range(K):
                    h0, w0 = dh + kh, dw + kw
                    cols.append(x[:, :, h0:h0 + 2 * Hp:2, w0:w0 + 2 * Wp:2, :])
            p = jnp.stack(cols, axis=2)                    # (T,B,KK,Hp,Wp,C)
            p = jnp.transpose(p, (0, 2, 5, 1, 3, 4))       # (T,KK,C,B,Hp,Wp)
            quads.append(p.reshape(T, K * K * C, B * Hp * Wp))
    return quads


# ----------------------------------------------------------------------------
# Net_Betas forward
# ----------------------------------------------------------------------------
def net_betas_forward(x, params, beta, threshold=1.0):
    """x: (T, B, Cin, H, W) float32.  Returns the 6 stacked records in the
    PyTorch layouts (spk1, spk2, spk_out, mem1, mem2, mem_out)."""
    T, B, Cin, H, W = x.shape
    C1, _, K1, _ = params["w1"].shape
    C2, _, K2, _ = params["w2"].shape
    Hp1, Wp1 = (H - K1 + 1) // 2, (W - K1 + 1) // 2
    Hp2, Wp2 = (Hp1 - K2 + 1) // 2, (Wp1 - K2 + 1) // 2
    cfg = _tpu_config()

    # ---- layer 1: conv1 + maxpool2 + Leaky (one fused kernel over all T) ----
    x_cl = jnp.transpose(x, (0, 1, 3, 4, 2))                        # (T,B,H,W,Cin)
    w1 = jnp.transpose(params["w1"], (0, 2, 3, 1)).reshape(C1, -1)  # (kh,kw,ci)
    spk1, mem1 = conv_pool_lif_layer(x_cl, w1, params["b1"], K1, beta, threshold, cfg)
    # spk1 (bf16), mem1 (f32): (T, C1, B*Hp1*Wp1), columns ordered (b, hp, wp)

    # ---- layer 2: conv2 + maxpool2 + Leaky (spk1 already bf16 0/1) ----
    spk1_cl = jnp.transpose(spk1.reshape(T, C1, B, Hp1, Wp1), (0, 2, 3, 4, 1))
    w2 = jnp.transpose(params["w2"], (0, 2, 3, 1)).reshape(C2, -1)
    spk2, mem2 = conv_pool_lif_layer(spk1_cl, w2, params["b2"], K2, beta, threshold, cfg)
    # spk2, mem2: (T, C2, B*Hp2*Wp2)

    # ---- fc layer: flatten in the torch (C, H, W) order, Linear + Leaky ----
    fc_in = jnp.transpose(spk2.reshape(T, C2, B, Hp2, Wp2),
                          (0, 1, 3, 4, 2)).reshape(T, C2 * Hp2 * Wp2, B)
    spk3, mem3 = fc_lif_layer(fc_in, params["w_fc"], params["b_fc"],
                              beta, threshold, cfg)                 # (T, CLASSES, B)

    # ---- back to the PyTorch record layouts (spikes recast to f32, lossless) ----
    def to_nchw(a, C, Hs, Ws):
        return jnp.transpose(a.reshape(T, C, B, Hs, Ws), (0, 2, 1, 3, 4))

    return (to_nchw(spk1.astype(jnp.float32), C1, Hp1, Wp1),
            to_nchw(spk2.astype(jnp.float32), C2, Hp2, Wp2),
            jnp.transpose(spk3.astype(jnp.float32), (0, 2, 1)),
            to_nchw(mem1, C1, Hp1, Wp1),
            to_nchw(mem2, C2, Hp2, Wp2),
            jnp.transpose(mem3, (0, 2, 1)))


# ----------------------------------------------------------------------------
if __name__ == "__main__":
    # FashionMNIST config: CHANNELS=[1,4,8], KERNELS=[5,5], 28x28 input:
    # 28 -conv5-> 24 -pool-> 12 -conv5-> 8 -pool-> 4 (RES_DIM=4), CLASSES=10.
    T, B, Cin, H, W = 3, 2, 1, 28, 28
    C1, C2, K, CLASSES, RES = 4, 8, 5, 10, 4
    BETA, THRESHOLD = 0.9, 1.0

    key = jax.random.PRNGKey(0)
    ks = jax.random.split(key, 7)
    x = jax.random.normal(ks[0], (T, B, Cin, H, W), jnp.float32)

    # deterministic synthetic parameters (PyTorch weight layouts)
    params = {
        "w1": jax.random.normal(ks[1], (C1, Cin, K, K), jnp.float32)
              / jnp.sqrt(Cin * K * K),
        "b1": 0.1 * jax.random.normal(ks[2], (C1,), jnp.float32),
        "w2": jax.random.normal(ks[3], (C2, C1, K, K), jnp.float32)
              / jnp.sqrt(C1 * K * K),
        "b2": 0.1 * jax.random.normal(ks[4], (C2,), jnp.float32),
        "w_fc": jax.random.normal(ks[5], (CLASSES, C2 * RES * RES), jnp.float32)
                / jnp.sqrt(C2 * RES * RES),
        "b_fc": 0.1 * jax.random.normal(ks[6], (CLASSES,), jnp.float32),
    }
    # TODO(synk): surrogate-gradient function (spike_grad) only changes the
    # backward pass; the forward spike is an exact heaviside, so it is not
    # represented here.

    fwd = jax.jit(net_betas_forward, static_argnames=("beta", "threshold"))
    outs = jax.block_until_ready(fwd(x, params, beta=BETA, threshold=THRESHOLD))
    spk1, spk2, spk_out, mem1, mem2, mem_out = outs

    assert spk1.shape == (T, B, C1, 12, 12) and mem1.shape == (T, B, C1, 12, 12)
    assert spk2.shape == (T, B, C2, RES, RES) and mem2.shape == (T, B, C2, RES, RES)
    assert spk_out.shape == (T, B, CLASSES) and mem_out.shape == (T, B, CLASSES)
    assert bool(jnp.all((spk_out == 0) | (spk_out == 1)))
    assert bool(jnp.all((spk1 == 0) | (spk1 == 1)))
    print("KERNEL_OK")
</pallas_src>

<mosaic_0001>
module attributes {stable_mosaic.version = 11 : i64} {
  func.func @_conv_pool_lif_kernel(%arg0: i32, %arg1: i32, %arg2: memref<4x25x1152xbf16, #tpu.memory_space<vmem>>, %arg3: memref<4x25xbf16, #tpu.memory_space<vmem>>, %arg4: memref<4x1xf32, #tpu.memory_space<vmem>>, %arg5: memref<16x288xbf16, #tpu.memory_space<vmem>>, %arg6: memref<16x288xf32, #tpu.memory_space<vmem>>, %arg7: memref<4x288xf32, #tpu.memory_space<vmem>>) attributes {dimension_semantics = [#tpu.dimension_semantics<parallel>, #tpu.dimension_semantics<arbitrary>], iteration_bounds = array<i64: 1, 1>, scalar_prefetch = 0 : i64, scratch_operands = 1 : i64, tpu.core_type = #tpu.core_type<tc>, window_params = [{transform_indices = @transform_0, window_bounds = array<i64: 4, 25, 1152>}, {pipeline_mode = #tpu.pipeline_mode<synchronous>, transform_indices = @transform_1, window_bounds = array<i64: 4, 25>}, {pipeline_mode = #tpu.pipeline_mode<synchronous>, transform_indices = @transform_2, window_bounds = array<i64: 4, 1>}, {transform_indices = @transform_3, window_bounds = array<i64: 16, 288>}, {transform_indices = @transform_4, window_bounds = array<i64: 16, 288>}]} {
    %c0_i32 = arith.constant 0 : i32
    %0 = arith.cmpi eq, %arg1, %c0_i32 : i32
    %1 = arith.extui %0 : i1 to i32
    %c0_i32_0 = arith.constant 0 : i32
    %2 = arith.cmpi ne, %1, %c0_i32_0 : i32
    scf.if %2 {
      %cst_61 = arith.constant 0.000000e+00 : f32
      %121 = vector.broadcast %cst_61 : f32 to vector<4x288xf32>
      %c0_62 = arith.constant 0 : index
      %c0_63 = arith.constant 0 : index
      %122 = vector.load %arg7[%c0_62, %c0_63] : memref<4x288xf32, #tpu.memory_space<vmem>>, vector<4x288xf32>
      tpu.vector_store %arg7[%c0_62, %c0_63], %121 {strides = array<i32>} : memref<4x288xf32, #tpu.memory_space<vmem>>, vector<4x288xf32>,
    } else {
    }
    %c0 = arith.constant 0 : index
    %c0_1 = arith.constant 0 : index
    %3 = vector.load %arg3[%c0, %c0_1] : memref<4x25xbf16, #tpu.memory_space<vmem>>, vector<4x25xbf16>
    %c0_2 = arith.constant 0 : index
    %c0_3 = arith.constant 0 : index
    %4 = vector.load %arg4[%c0_2, %c0_3] : memref<4x1xf32, #tpu.memory_space<vmem>>, vector<4x1xf32>
    %5 = vector.shape_cast %4 : vector<4x1xf32> to vector<4x1xf32>
    %6 = vector.broadcast %5 : vector<4x1xf32> to vector<4x288xf32>
    %c0_4 = arith.constant 0 : index
    %c0_5 = arith.constant 0 : index
    %7 = vector.load %arg7[%c0_4, %c0_5] : memref<4x288xf32, #tpu.memory_space<vmem>>, vector<4x288xf32>
    %c0_6 = arith.constant 0 : index
    %c0_7 = arith.constant 0 : index
    %c0_8 = arith.constant 0 : index
    %8 = vector.load %arg2[%c0_6, %c0_7, %c0_8] : memref<4x25x1152xbf16, #tpu.memory_space<vmem>>, vector<1x25x1152xbf16>
    %9 = vector.shape_cast %8 : vector<1x25x1152xbf16> to vector<25x1152xbf16>
    %cst = arith.constant dense<0.000000e+00> : vector<4x1152xf32>
    %10 = tpu.matmul %3, %9, %cst {dimension_numbers = #tpu.dot_dimension_numbers<[1], [0], [0], [1], [0, 0, 1, 1], [], []>} : vector<4x25xbf16>, vector<25x1152xbf16>, vector<4x1152xf32> -> vector<4x1152xf32>
    %11 = vector.extract_strided_slice %10 {offsets = [0, 0], sizes = [4, 288], strides = [1, 1]} : vector<4x1152xf32> to vector<4x288xf32>
    %12 = vector.extract_strided_slice %10 {offsets = [0, 288], sizes = [4, 288], strides = [1, 1]} : vector<4x1152xf32> to vector<4x288xf32>
    %13 = arith.maximumf %11, %12 : vector<4x288xf32>
    %14 = vector.extract_strided_slice %10 {offsets = [0, 576], sizes = [4, 288], strides = [1, 1]} : vector<4x1152xf32> to vector<4x288xf32>
    %15 = vector.extract_strided_slice %10 {offsets = [0, 864], sizes = [4, 288], strides = [1, 1]} : vector<4x1152xf32> to vector<4x288xf32>
    %16 = arith.maximumf %14, %15 : vector<4x288xf32>
    %17 = arith.maximumf %13, %16 : vector<4x288xf32>
    %18 = arith.addf %17, %6 : vector<4x288xf32>
    %cst_9 = arith.constant 1.000000e+00 : f32
    %19 = vector.broadcast %cst_9 : f32 to vector<4x288xf32>
    %20 = arith.cmpf ogt, %7, %19 : vector<4x288xf32>
    %cst_10 = arith.constant 1.000000e+00 : f32
    %cst_11 = arith.constant 0.000000e+00 : f32
    %21 = vector.broadcast %cst_10 : f32 to vector<4x288xf32>
    %22 = vector.broadcast %cst_11 : f32 to vector<4x288xf32>
    %23 = arith.select %20, %21, %22 : vector<4x288xi1>, vector<4x288xf32>
    %cst_12 = arith.constant 0.899999976 : f32
    %24 = vector.broadcast %cst_12 : f32 to vector<4x288xf32>
    %25 = arith.mulf %24, %7 : vector<4x288xf32>
    %26 = arith.addf %25, %18 : vector<4x288xf32>
    %27 = arith.subf %26, %23 : vector<4x288xf32>
    %cst_13 = arith.constant 1.000000e+00 : f32
    %28 = vector.broadcast %cst_13 : f32 to vector<4x288xf32>
    %29 = arith.cmpf ogt, %27, %28 : vector<4x288xf32>
    %cst_14 = arith.constant 1.000000e+00 : f32
    %cst_15 = arith.constant 0.000000e+00 : f32
    %30 = vector.broadcast %cst_14 : f32 to vector<4x288xf32>
    %31 = vector.broadcast %cst_15 : f32 to vector<4x288xf32>
    %32 = arith.select %29, %30, %31 : vector<4x288xi1>, vector<4x288xf32>
    %33 = arith.truncf %32 : vector<4x288xf32> to vector<4x288xbf16>
    %c0_16 = arith.constant 0 : index
    %c0_17 = arith.constant 0 : index
    %34 = vector.load %arg5[%c0_16, %c0_17] : memref<16x288xbf16, #tpu.memory_space<vmem>>, vector<4x288xbf16>
    tpu.vector_store %arg5[%c0_16, %c0_17], %33 {strides = array<i32>} : memref<16x288xbf16, #tpu.memory_space<vmem>>, vector<4x288xbf16>,
    %c0_18 = arith.constant 0 : index
    %c0_19 = arith.constant 0 : index
    %35 = vector.load %arg6[%c0_18, %c0_19] : memref<16x288xf32, #tpu.memory_space<vmem>>, vector<4x288xf32>
    tpu.vector_store %arg6[%c0_18, %c0_19], %27 {strides = array<i32>} : memref<16x288xf32, #tpu.memory_space<vmem>>, vector<4x288xf32>,
    %c1 = arith.constant 1 : index
    %c0_20 = arith.constant 0 : index
    %c0_21 = arith.constant 0 : index
    %36 = vector.load %arg2[%c1, %c0_20, %c0_21] : memref<4x25x1152xbf16, #tpu.memory_space<vmem>>, vector<1x25x1152xbf16>
    %37 = vector.shape_cast %36 : vector<1x25x1152xbf16> to vector<25x1152xbf16>
    %cst_22 = arith.constant dense<0.000000e+00> : vector<4x1152xf32>
    %38 = tpu.matmul %3, %37, %cst_22 {dimension_numbers = #tpu.dot_dimension_numbers<[1], [0], [0], [1], [0, 0, 1, 1], [], []>} : vector<4x25xbf16>, vector<25x1152xbf16>, vector<4x1152xf32> -> vector<4x1152xf32>
    %39 = vector.extract_strided_slice %38 {offsets = [0, 0], sizes = [4, 288], strides = [1, 1]} : vector<4x1152xf32> to vector<4x288xf32>
    %40 = vector.extract_strided_slice %38 {offsets = [0, 288], sizes = [4, 288], strides = [1, 1]} : vector<4x1152xf32> to vector<4x288xf32>
    %41 = arith.maximumf %39, %40 : vector<4x288xf32>
    %42 = vector.extract_strided_slice %38 {offsets = [0, 576], sizes = [4, 288], strides = [1, 1]} : vector<4x1152xf32> to vector<4x288xf32>
    %43 = vector.extract_strided_slice %38 {offsets = [0, 864], sizes = [4, 288], strides = [1, 1]} : vector<4x1152xf32> to vector<4x288xf32>
    %44 = arith.maximumf %42, %43 : vector<4x288xf32>
    %45 = arith.maximumf %41, %44 : vector<4x288xf32>
    %46 = arith.addf %45, %6 : vector<4x288xf32>
    %cst_23 = arith.constant 1.000000e+00 : f32
    %47 = vector.broadcast %cst_23 : f32 to vector<4x288xf32>
    %48 = arith.cmpf ogt, %27, %47 : vector<4x288xf32>
    %cst_24 = arith.constant 1.000000e+00 : f32
    %cst_25 = arith.constant 0.000000e+00 : f32
    %49 = vector.broadcast %cst_24 : f32 to vector<4x288xf32>
    %50 = vector.broadcast %cst_25 : f32 to vector<4x288xf32>
    %51 = arith.select %48, %49, %50 : vector<4x288xi1>, vector<4x288xf32>
    %cst_26 = arith.constant 0.899999976 : f32
    %52 = vector.broadcast %cst_26 : f32 to vector<4x288xf32>
    %53 = arith.mulf %52, %27 : vector<4x288xf32>
    %54 = arith.addf %53, %46 : vector<4x288xf32>
    %55 = arith.subf %54, %51 : vector<4x288xf32>
    %cst_27 = arith.constant 1.000000e+00 : f32
    %56 = vector.broadcast %cst_27 : f32 to vector<4x288xf32>
    %57 = arith.cmpf ogt, %55, %56 : vector<4x288xf32>
    %cst_28 = arith.constant 1.000000e+00 : f32
    %cst_29 = arith.constant 0.000000e+00 : f32
    %58 = vector.broadcast %cst_28 : f32 to vector<4x288xf32>
    %59 = vector.broadcast %cst_29 : f32 to vector<4x288xf32>
    %60 = arith.select %57, %58, %59 : vector<4x288xi1>, vector<4x288xf32>
    %61 = arith.truncf %60 : vector<4x288xf32> to vector<4x288xbf16>
    %c4 = arith.constant 4 : index
    %c0_30 = arith.constant 0 : index
    %62 = vector.load %arg5[%c4, %c0_30] : memref<16x288xbf16, #tpu.memory_space<vmem>>, vector<4x288xbf16>
    tpu.vector_store %arg5[%c4, %c0_30], %61 {strides = array<i32>} : memref<16x288xbf16, #tpu.memory_space<vmem>>, vector<4x288xbf16>,
    %c4_31 = arith.constant 4 : index
    %c0_32 = arith.constant 0 : index
    %63 = vector.load %arg6[%c4_31, %c0_32] : memref<16x288xf32, #tpu.memory_space<vmem>>, vector<4x288xf32>
    tpu.vector_store %arg6[%c4_31, %c0_32], %55 {strides = array<i32>} : memref<16x288xf32, #tpu.memory_space<vmem>>, vector<4x288xf32>,
    %c2 = arith.constant 2 : index
    %c0_33 = arith.constant 0 : index
    %c0_34 = arith.constant 0 : index
    %64 = vector.load %arg2[%c2, %c0_33, %c0_34] : memref<4x25x1152xbf16, #tpu.memory_space<vmem>>, vector<1x25x1152xbf16>
    %65 = vector.shape_cast %64 : vector<1x25x1152xbf16> to vector<25x1152xbf16>
    %cst_35 = arith.constant dense<0.000000e+00> : vector<4x1152xf32>
    %66 = tpu.matmul %3, %65, %cst_35 {dimension_numbers = #tpu.dot_dimension_numbers<[1], [0], [0], [1], [0, 0, 1, 1], [], []>} : vector<4x25xbf16>, vector<25x1152xbf16>, vector<4x1152xf32> -> vector<4x1152xf32>
    %67 = vector.extract_strided_slice %66 {offsets = [0, 0], sizes = [4, 288], strides = [1, 1]} : vector<4x1152xf32> to vector<4x288xf32>
    %68 = vector.extract_strided_slice %66 {offsets = [0, 288], sizes = [4, 288], strides = [1, 1]} : vector<4x1152xf32> to vector<4x288xf32>
    %69 = arith.maximumf %67, %68 : vector<4x288xf32>
    %70 = vector.extract_strided_slice %66 {offsets = [0, 576], sizes = [4, 288], strides = [1, 1]} : vector<4x1152xf32> to vector<4x288xf32>
    %71 = vector.extract_strided_slice %66 {offsets = [0, 864], sizes = [4, 288], strides = [1, 1]} : vector<4x1152xf32> to vector<4x288xf32>
    %72 = arith.maximumf %70, %71 : vector<4x288xf32>
    %73 = arith.maximumf %69, %72 : vector<4x288xf32>
    %74 = arith.addf %73, %6 : vector<4x288xf32>
    %cst_36 = arith.constant 1.000000e+00 : f32
    %75 = vector.broadcast %cst_36 : f32 to vector<4x288xf32>
    %76 = arith.cmpf ogt, %55, %75 : vector<4x288xf32>
    %cst_37 = arith.constant 1.000000e+00 : f32
    %cst_38 = arith.constant 0.000000e+00 : f32
    %77 = vector.broadcast %cst_37 : f32 to vector<4x288xf32>
    %78 = vector.broadcast %cst_38 : f32 to vector<4x288xf32>
    %79 = arith.select %76, %77, %78 : vector<4x288xi1>, vector<4x288xf32>
    %cst_39 = arith.constant 0.899999976 : f32
    %80 = vector.broadcast %cst_39 : f32 to vector<4x288xf32>
    %81 = arith.mulf %80, %55 : vector<4x288xf32>
    %82 = arith.addf %81, %74 : vector<4x288xf32>
    %83 = arith.subf %82, %79 : vector<4x288xf32>
    %cst_40 = arith.constant 1.000000e+00 : f32
    %84 = vector.broadcast %cst_40 : f32 to vector<4x288xf32>
    %85 = arith.cmpf ogt, %83, %84 : vector<4x288xf32>
    %cst_41 = arith.constant 1.000000e+00 : f32
    %cst_42 = arith.constant 0.000000e+00 : f32
    %86 = vector.broadcast %cst_41 : f32 to vector<4x288xf32>
    %87 = vector.broadcast %cst_42 : f32 to vector<4x288xf32>
    %88 = arith.select %85, %86, %87 : vector<4x288xi1>, vector<4x288xf32>
    %89 = arith.truncf %88 : vector<4x288xf32> to vector<4x288xbf16>
    %c8 = arith.constant 8 : index
    %c0_43 = arith.constant 0 : index
    %90 = vector.load %arg5[%c8, %c0_43] : memref<16x288xbf16, #tpu.memory_space<vmem>>, vector<4x288xbf16>
    tpu.vector_store %arg5[%c8, %c0_43], %89 {strides = array<i32>} : memref<16x288xbf16, #tpu.memory_space<vmem>>, vector<4x288xbf16>,
    %c8_44 = arith.constant 8 : index
    %c0_45 = arith.constant 0 : index
    %91 = vector.load %arg6[%c8_44, %c0_45] : memref<16x288xf32, #tpu.memory_space<vmem>>, vector<4x288xf32>
    tpu.vector_store %arg6[%c8_44, %c0_45], %83 {strides = array<i32>} : memref<16x288xf32, #tpu.memory_space<vmem>>, vector<4x288xf32>,
    %c3 = arith.constant 3 : index
    %c0_46 = arith.constant 0 : index
    %c0_47 = arith.constant 0 : index
    %92 = vector.load %arg2[%c3, %c0_46, %c0_47] : memref<4x25x1152xbf16, #tpu.memory_space<vmem>>, vector<1x25x1152xbf16>
    %93 = vector.shape_cast %92 : vector<1x25x1152xbf16> to vector<25x1152xbf16>
    %cst_48 = arith.constant dense<0.000000e+00> : vector<4x1152xf32>
    %94 = tpu.matmul %3, %93, %cst_48 {dimension_numbers = #tpu.dot_dimension_numbers<[1], [0], [0], [1], [0, 0, 1, 1], [], []>} : vector<4x25xbf16>, vector<25x1152xbf16>, vector<4x1152xf32> -> vector<4x1152xf32>
    %95 = vector.extract_strided_slice %94 {offsets = [0, 0], sizes = [4, 288], strides = [1, 1]} : vector<4x1152xf32> to vector<4x288xf32>
    %96 = vector.extract_strided_slice %94 {offsets = [0, 288], sizes = [4, 288], strides = [1, 1]} : vector<4x1152xf32> to vector<4x288xf32>
    %97 = arith.maximumf %95, %96 : vector<4x288xf32>
    %98 = vector.extract_strided_slice %94 {offsets = [0, 576], sizes = [4, 288], strides = [1, 1]} : vector<4x1152xf32> to vector<4x288xf32>
    %99 = vector.extract_strided_slice %94 {offsets = [0, 864], sizes = [4, 288], strides = [1, 1]} : vector<4x1152xf32> to vector<4x288xf32>
    %100 = arith.maximumf %98, %99 : vector<4x288xf32>
    %101 = arith.maximumf %97, %100 : vector<4x288xf32>
    %102 = arith.addf %101, %6 : vector<4x288xf32>
    %cst_49 = arith.constant 1.000000e+00 : f32
    %103 = vector.broadcast %cst_49 : f32 to vector<4x288xf32>
    %104 = arith.cmpf ogt, %83, %103 : vector<4x288xf32>
    %cst_50 = arith.constant 1.000000e+00 : f32
    %cst_51 = arith.constant 0.000000e+00 : f32
    %105 = vector.broadcast %cst_50 : f32 to vector<4x288xf32>
    %106 = vector.broadcast %cst_51 : f32 to vector<4x288xf32>
    %107 = arith.select %104, %105, %106 : vector<4x288xi1>, vector<4x288xf32>
    %cst_52 = arith.constant 0.899999976 : f32
    %108 = vector.broadcast %cst_52 : f32 to vector<4x288xf32>
    %109 = arith.mulf %108, %83 : vector<4x288xf32>
    %110 = arith.addf %109, %102 : vector<4x288xf32>
    %111 = arith.subf %110, %107 : vector<4x288xf32>
    %cst_53 = arith.constant 1.000000e+00 : f32
    %112 = vector.broadcast %cst_53 : f32 to vector<4x288xf32>
    %113 = arith.cmpf ogt, %111, %112 : vector<4x288xf32>
    %cst_54 = arith.constant 1.000000e+00 : f32
    %cst_55 = arith.constant 0.000000e+00 : f32
    %114 = vector.broadcast %cst_54 : f32 to vector<4x288xf32>
    %115 = vector.broadcast %cst_55 : f32 to vector<4x288xf32>
    %116 = arith.select %113, %114, %115 : vector<4x288xi1>, vector<4x288xf32>
    %117 = arith.truncf %116 : vector<4x288xf32> to vector<4x288xbf16>
    %c12 = arith.constant 12 : index
    %c0_56 = arith.constant 0 : index
    %118 = vector.load %arg5[%c12, %c0_56] : memref<16x288xbf16, #tpu.memory_space<vmem>>, vector<4x288xbf16>
    tpu.vector_store %arg5[%c12, %c0_56], %117 {strides = array<i32>} : memref<16x288xbf16, #tpu.memory_space<vmem>>, vector<4x288xbf16>,
    %c12_57 = arith.constant 12 : index
    %c0_58 = arith.constant 0 : index
    %119 = vector.load %arg6[%c12_57, %c0_58] : memref<16x288xf32, #tpu.memory_space<vmem>>, vector<4x288xf32>
    tpu.vector_store %arg6[%c12_57, %c0_58], %111 {strides = array<i32>} : memref<16x288xf32, #tpu.memory_space<vmem>>, vector<4x288xf32>,
    %c0_59 = arith.constant 0 : index
    %c0_60 = arith.constant 0 : index
    %120 = vector.load %arg7[%c0_59, %c0_60] : memref<4x288xf32, #tpu.memory_space<vmem>>, vector<4x288xf32>
    tpu.vector_store %arg7[%c0_59, %c0_60], %111 {strides = array<i32>} : memref<4x288xf32, #tpu.memory_space<vmem>>, vector<4x288xf32>,
    return
  }
  func.func @transform_0(%arg0: i32, %arg1: i32) -> (i32, i32, i32) {
    %c0_i32 = arith.constant 0 : i32
    %c0_i32_0 = arith.constant 0 : i32
    return %arg1, %c0_i32, %arg0 : i32, i32, i32
  }
  func.func @transform_1(%arg0: i32, %arg1: i32) -> (i32, i32) {
    %c0_i32 = arith.constant 0 : i32
    %c0_i32_0 = arith.constant 0 : i32
    %c0_i32_1 = arith.constant 0 : i32
    return %c0_i32, %c0_i32_0 : i32, i32
  }
  func.func @transform_2(%arg0: i32, %arg1: i32) -> (i32, i32) {
    %c0_i32 = arith.constant 0 : i32
    %c0_i32_0 = arith.constant 0 : i32
    %c0_i32_1 = arith.constant 0 : i32
    return %c0_i32, %c0_i32_0 : i32, i32
  }
  func.func @transform_3(%arg0: i32, %arg1: i32) -> (i32, i32) {
    %c0_i32 = arith.constant 0 : i32
    return %arg1, %arg0 : i32, i32
  }
  func.func @transform_4(%arg0: i32, %arg1: i32) -> (i32, i32) {
    %c0_i32 = arith.constant 0 : i32
    return %arg1, %arg0 : i32, i32
  }
}

module attributes {stable_mosaic.version = 11 : i64} {
  func.func @_conv_pool_lif_kernel(%arg0: i32, %arg1: i32, %arg2: memref<3x100x128xbf16, #tpu.memory_space<vmem>>, %arg3: memref<8x100xbf16, #tpu.memory_space<vmem>>, %arg4: memref<8x1xf32, #tpu.memory_space<vmem>>, %arg5: memref<24x32xbf16, #tpu.memory_space<vmem>>, %arg6: memref<24x32xf32, #tpu.memory_space<vmem>>, %arg7: memref<8x32xf32, #tpu.memory_space<vmem>>) attributes {dimension_semantics = [#tpu.dimension_semantics<parallel>, #tpu.dimension_semantics<arbitrary>], iteration_bounds = array<i64: 1, 1>, scalar_prefetch = 0 : i64, scratch_operands = 1 : i64, tpu.core_type = #tpu.core_type<tc>, window_params = [{transform_indices = @transform_0, window_bounds = array<i64: 3, 100, 128>}, {pipeline_mode = #tpu.pipeline_mode<synchronous>, transform_indices = @transform_1, window_bounds = array<i64: 8, 100>}, {pipeline_mode = #tpu.pipeline_mode<synchronous>, transform_indices = @transform_2, window_bounds = array<i64: 8, 1>}, {transform_indices = @transform_3, window_bounds = array<i64: 24, 32>}, {transform_indices = @transform_4, window_bounds = array<i64: 24, 32>}]} {
    %c0_i32 = arith.constant 0 : i32
    %0 = arith.cmpi eq, %arg1, %c0_i32 : i32
    %1 = arith.extui %0 : i1 to i32
    %c0_i32_0 = arith.constant 0 : i32
    %2 = arith.cmpi ne, %1, %c0_i32_0 : i32
    scf.if %2 {
      %cst_48 = arith.constant 0.000000e+00 : f32
      %93 = vector.broadcast %cst_48 : f32 to vector<8x32xf32>
      %c0_49 = arith.constant 0 : index
      %c0_50 = arith.constant 0 : index
      %94 = vector.load %arg7[%c0_49, %c0_50] : memref<8x32xf32, #tpu.memory_space<vmem>>, vector<8x32xf32>
      tpu.vector_store %arg7[%c0_49, %c0_50], %93 {strides = array<i32>} : memref<8x32xf32, #tpu.memory_space<vmem>>, vector<8x32xf32>,
    } else {
    }
    %c0 = arith.constant 0 : index
    %c0_1 = arith.constant 0 : index
    %3 = vector.load %arg3[%c0, %c0_1] : memref<8x100xbf16, #tpu.memory_space<vmem>>, vector<8x100xbf16>
    %c0_2 = arith.constant 0 : index
    %c0_3 = arith.constant 0 : index
    %4 = vector.load %arg4[%c0_2, %c0_3] : memref<8x1xf32, #tpu.memory_space<vmem>>, vector<8x1xf32>
    %5 = vector.shape_cast %4 : vector<8x1xf32> to vector<8x1xf32>
    %6 = vector.broadcast %5 : vector<8x1xf32> to vector<8x32xf32>
    %c0_4 = arith.constant 0 : index
    %c0_5 = arith.constant 0 : index
    %7 = vector.load %arg7[%c0_4, %c0_5] : memref<8x32xf32, #tpu.memory_space<vmem>>, vector<8x32xf32>
    %c0_6 = arith.constant 0 : index
    %c0_7 = arith.constant 0 : index
    %c0_8 = arith.constant 0 : index
    %8 = vector.load %arg2[%c0_6, %c0_7, %c0_8] : memref<3x100x128xbf16, #tpu.memory_space<vmem>>, vector<1x100x128xbf16>
    %9 = vector.shape_cast %8 : vector<1x100x128xbf16> to vector<100x128xbf16>
    %cst = arith.constant dense<0.000000e+00> : vector<8x128xf32>
    %10 = tpu.matmul %3, %9, %cst {dimension_numbers = #tpu.dot_dimension_numbers<[1], [0], [0], [1], [0, 0, 1, 1], [], []>} : vector<8x100xbf16>, vector<100x128xbf16>, vector<8x128xf32> -> vector<8x128xf32>
    %11 = vector.extract_strided_slice %10 {offsets = [0, 0], sizes = [8, 32], strides = [1, 1]} : vector<8x128xf32> to vector<8x32xf32>
    %12 = vector.extract_strided_slice %10 {offsets = [0, 32], sizes = [8, 32], strides = [1, 1]} : vector<8x128xf32> to vector<8x32xf32>
    %13 = arith.maximumf %11, %12 : vector<8x32xf32>
    %14 = vector.extract_strided_slice %10 {offsets = [0, 64], sizes = [8, 32], strides = [1, 1]} : vector<8x128xf32> to vector<8x32xf32>
    %15 = vector.extract_strided_slice %10 {offsets = [0, 96], sizes = [8, 32], strides = [1, 1]} : vector<8x128xf32> to vector<8x32xf32>
    %16 = arith.maximumf %14, %15 : vector<8x32xf32>
    %17 = arith.maximumf %13, %16 : vector<8x32xf32>
    %18 = arith.addf %17, %6 : vector<8x32xf32>
    %cst_9 = arith.constant 1.000000e+00 : f32
    %19 = vector.broadcast %cst_9 : f32 to vector<8x32xf32>
    %20 = arith.cmpf ogt, %7, %19 : vector<8x32xf32>
    %cst_10 = arith.constant 1.000000e+00 : f32
    %cst_11 = arith.constant 0.000000e+00 : f32
    %21 = vector.broadcast %cst_10 : f32 to vector<8x32xf32>
    %22 = vector.broadcast %cst_11 : f32 to vector<8x32xf32>
    %23 = arith.select %20, %21, %22 : vector<8x32xi1>, vector<8x32xf32>
    %cst_12 = arith.constant 0.899999976 : f32
    %24 = vector.broadcast %cst_12 : f32 to vector<8x32xf32>
    %25 = arith.mulf %24, %7 : vector<8x32xf32>
    %26 = arith.addf %25, %18 : vector<8x32xf32>
    %27 = arith.subf %26, %23 : vector<8x32xf32>
    %cst_13 = arith.constant 1.000000e+00 : f32
    %28 = vector.broadcast %cst_13 : f32 to vector<8x32xf32>
    %29 = arith.cmpf ogt, %27, %28 : vector<8x32xf32>
    %cst_14 = arith.constant 1.000000e+00 : f32
    %cst_15 = arith.constant 0.000000e+00 : f32
    %30 = vector.broadcast %cst_14 : f32 to vector<8x32xf32>
    %31 = vector.broadcast %cst_15 : f32 to vector<8x32xf32>
    %32 = arith.select %29, %30, %31 : vector<8x32xi1>, vector<8x32xf32>
    %33 = arith.truncf %32 : vector<8x32xf32> to vector<8x32xbf16>
    %c0_16 = arith.constant 0 : index
    %c0_17 = arith.constant 0 : index
    %34 = vector.load %arg5[%c0_16, %c0_17] : memref<24x32xbf16, #tpu.memory_space<vmem>>, vector<8x32xbf16>
    tpu.vector_store %arg5[%c0_16, %c0_17], %33 {strides = array<i32>} : memref<24x32xbf16, #tpu.memory_space<vmem>>, vector<8x32xbf16>,
    %c0_18 = arith.constant 0 : index
    %c0_19 = arith.constant 0 : index
    %35 = vector.load %arg6[%c0_18, %c0_19] : memref<24x32xf32, #tpu.memory_space<vmem>>, vector<8x32xf32>
    tpu.vector_store %arg6[%c0_18, %c0_19], %27 {strides = array<i32>} : memref<24x32xf32, #tpu.memory_space<vmem>>, vector<8x32xf32>,
    %c1 = arith.constant 1 : index
    %c0_20 = arith.constant 0 : index
    %c0_21 = arith.constant 0 : index
    %36 = vector.load %arg2[%c1, %c0_20, %c0_21] : memref<3x100x128xbf16, #tpu.memory_space<vmem>>, vector<1x100x128xbf16>
    %37 = vector.shape_cast %36 : vector<1x100x128xbf16> to vector<100x128xbf16>
    %cst_22 = arith.constant dense<0.000000e+00> : vector<8x128xf32>
    %38 = tpu.matmul %3, %37, %cst_22 {dimension_numbers = #tpu.dot_dimension_numbers<[1], [0], [0], [1], [0, 0, 1, 1], [], []>} : vector<8x100xbf16>, vector<100x128xbf16>, vector<8x128xf32> -> vector<8x128xf32>
    %39 = vector.extract_strided_slice %38 {offsets = [0, 0], sizes = [8, 32], strides = [1, 1]} : vector<8x128xf32> to vector<8x32xf32>
    %40 = vector.extract_strided_slice %38 {offsets = [0, 32], sizes = [8, 32], strides = [1, 1]} : vector<8x128xf32> to vector<8x32xf32>
    %41 = arith.maximumf %39, %40 : vector<8x32xf32>
    %42 = vector.extract_strided_slice %38 {offsets = [0, 64], sizes = [8, 32], strides = [1, 1]} : vector<8x128xf32> to vector<8x32xf32>
    %43 = vector.extract_strided_slice %38 {offsets = [0, 96], sizes = [8, 32], strides = [1, 1]} : vector<8x128xf32> to vector<8x32xf32>
    %44 = arith.maximumf %42, %43 : vector<8x32xf32>
    %45 = arith.maximumf %41, %44 : vector<8x32xf32>
    %46 = arith.addf %45, %6 : vector<8x32xf32>
    %cst_23 = arith.constant 1.000000e+00 : f32
    %47 = vector.broadcast %cst_23 : f32 to vector<8x32xf32>
    %48 = arith.cmpf ogt, %27, %47 : vector<8x32xf32>
    %cst_24 = arith.constant 1.000000e+00 : f32
    %cst_25 = arith.constant 0.000000e+00 : f32
    %49 = vector.broadcast %cst_24 : f32 to vector<8x32xf32>
    %50 = vector.broadcast %cst_25 : f32 to vector<8x32xf32>
    %51 = arith.select %48, %49, %50 : vector<8x32xi1>, vector<8x32xf32>
    %cst_26 = arith.constant 0.899999976 : f32
    %52 = vector.broadcast %cst_26 : f32 to vector<8x32xf32>
    %53 = arith.mulf %52, %27 : vector<8x32xf32>
    %54 = arith.addf %53, %46 : vector<8x32xf32>
    %55 = arith.subf %54, %51 : vector<8x32xf32>
    %cst_27 = arith.constant 1.000000e+00 : f32
    %56 = vector.broadcast %cst_27 : f32 to vector<8x32xf32>
    %57 = arith.cmpf ogt, %55, %56 : vector<8x32xf32>
    %cst_28 = arith.constant 1.000000e+00 : f32
    %cst_29 = arith.constant 0.000000e+00 : f32
    %58 = vector.broadcast %cst_28 : f32 to vector<8x32xf32>
    %59 = vector.broadcast %cst_29 : f32 to vector<8x32xf32>
    %60 = arith.select %57, %58, %59 : vector<8x32xi1>, vector<8x32xf32>
    %61 = arith.truncf %60 : vector<8x32xf32> to vector<8x32xbf16>
    %c8 = arith.constant 8 : index
    %c0_30 = arith.constant 0 : index
    %62 = vector.load %arg5[%c8, %c0_30] : memref<24x32xbf16, #tpu.memory_space<vmem>>, vector<8x32xbf16>
    tpu.vector_store %arg5[%c8, %c0_30], %61 {strides = array<i32>} : memref<24x32xbf16, #tpu.memory_space<vmem>>, vector<8x32xbf16>,
    %c8_31 = arith.constant 8 : index
    %c0_32 = arith.constant 0 : index
    %63 = vector.load %arg6[%c8_31, %c0_32] : memref<24x32xf32, #tpu.memory_space<vmem>>, vector<8x32xf32>
    tpu.vector_store %arg6[%c8_31, %c0_32], %55 {strides = array<i32>} : memref<24x32xf32, #tpu.memory_space<vmem>>, vector<8x32xf32>,
    %c2 = arith.constant 2 : index
    %c0_33 = arith.constant 0 : index
    %c0_34 = arith.constant 0 : index
    %64 = vector.load %arg2[%c2, %c0_33, %c0_34] : memref<3x100x128xbf16, #tpu.memory_space<vmem>>, vector<1x100x128xbf16>
    %65 = vector.shape_cast %64 : vector<1x100x128xbf16> to vector<100x128xbf16>
    %cst_35 = arith.constant dense<0.000000e+00> : vector<8x128xf32>
    %66 = tpu.matmul %3, %65, %cst_35 {dimension_numbers = #tpu.dot_dimension_numbers<[1], [0], [0], [1], [0, 0, 1, 1], [], []>} : vector<8x100xbf16>, vector<100x128xbf16>, vector<8x128xf32> -> vector<8x128xf32>
    %67 = vector.extract_strided_slice %66 {offsets = [0, 0], sizes = [8, 32], strides = [1, 1]} : vector<8x128xf32> to vector<8x32xf32>
    %68 = vector.extract_strided_slice %66 {offsets = [0, 32], sizes = [8, 32], strides = [1, 1]} : vector<8x128xf32> to vector<8x32xf32>
    %69 = arith.maximumf %67, %68 : vector<8x32xf32>
    %70 = vector.extract_strided_slice %66 {offsets = [0, 64], sizes = [8, 32], strides = [1, 1]} : vector<8x128xf32> to vector<8x32xf32>
    %71 = vector.extract_strided_slice %66 {offsets = [0, 96], sizes = [8, 32], strides = [1, 1]} : vector<8x128xf32> to vector<8x32xf32>
    %72 = arith.maximumf %70, %71 : vector<8x32xf32>
    %73 = arith.maximumf %69, %72 : vector<8x32xf32>
    %74 = arith.addf %73, %6 : vector<8x32xf32>
    %cst_36 = arith.constant 1.000000e+00 : f32
    %75 = vector.broadcast %cst_36 : f32 to vector<8x32xf32>
    %76 = arith.cmpf ogt, %55, %75 : vector<8x32xf32>
    %cst_37 = arith.constant 1.000000e+00 : f32
    %cst_38 = arith.constant 0.000000e+00 : f32
    %77 = vector.broadcast %cst_37 : f32 to vector<8x32xf32>
    %78 = vector.broadcast %cst_38 : f32 to vector<8x32xf32>
    %79 = arith.select %76, %77, %78 : vector<8x32xi1>, vector<8x32xf32>
    %cst_39 = arith.constant 0.899999976 : f32
    %80 = vector.broadcast %cst_39 : f32 to vector<8x32xf32>
    %81 = arith.mulf %80, %55 : vector<8x32xf32>
    %82 = arith.addf %81, %74 : vector<8x32xf32>
    %83 = arith.subf %82, %79 : vector<8x32xf32>
    %cst_40 = arith.constant 1.000000e+00 : f32
    %84 = vector.broadcast %cst_40 : f32 to vector<8x32xf32>
    %85 = arith.cmpf ogt, %83, %84 : vector<8x32xf32>
    %cst_41 = arith.constant 1.000000e+00 : f32
    %cst_42 = arith.constant 0.000000e+00 : f32
    %86 = vector.broadcast %cst_41 : f32 to vector<8x32xf32>
    %87 = vector.broadcast %cst_42 : f32 to vector<8x32xf32>
    %88 = arith.select %85, %86, %87 : vector<8x32xi1>, vector<8x32xf32>
    %89 = arith.truncf %88 : vector<8x32xf32> to vector<8x32xbf16>
    %c16 = arith.constant 16 : index
    %c0_43 = arith.constant 0 : index
    %90 = vector.load %arg5[%c16, %c0_43] : memref<24x32xbf16, #tpu.memory_space<vmem>>, vector<8x32xbf16>
    tpu.vector_store %arg5[%c16, %c0_43], %89 {strides = array<i32>} : memref<24x32xbf16, #tpu.memory_space<vmem>>, vector<8x32xbf16>,
    %c16_44 = arith.constant 16 : index
    %c0_45 = arith.constant 0 : index
    %91 = vector.load %arg6[%c16_44, %c0_45] : memref<24x32xf32, #tpu.memory_space<vmem>>, vector<8x32xf32>
    tpu.vector_store %arg6[%c16_44, %c0_45], %83 {strides = array<i32>} : memref<24x32xf32, #tpu.memory_space<vmem>>, vector<8x32xf32>,
    %c0_46 = arith.constant 0 : index
    %c0_47 = arith.constant 0 : index
    %92 = vector.load %arg7[%c0_46, %c0_47] : memref<8x32xf32, #tpu.memory_space<vmem>>, vector<8x32xf32>
    tpu.vector_store %arg7[%c0_46, %c0_47], %83 {strides = array<i32>} : memref<8x32xf32, #tpu.memory_space<vmem>>, vector<8x32xf32>,
    return
  }
  func.func @transform_0(%arg0: i32, %arg1: i32) -> (i32, i32, i32) {
    %c0_i32 = arith.constant 0 : i32
    %c0_i32_0 = arith.constant 0 : i32
    return %arg1, %c0_i32, %arg0 : i32, i32, i32
  }
  func.func @transform_1(%arg0: i32, %arg1: i32) -> (i32, i32) {
    %c0_i32 = arith.constant 0 : i32
    %c0_i32_0 = arith.constant 0 : i32
    %c0_i32_1 = arith.constant 0 : i32
    return %c0_i32, %c0_i32_0 : i32, i32
  }
  func.func @transform_2(%arg0: i32, %arg1: i32) -> (i32, i32) {
    %c0_i32 = arith.constant 0 : i32
    %c0_i32_0 = arith.constant 0 : i32
    %c0_i32_1 = arith.constant 0 : i32
    return %c0_i32, %c0_i32_0 : i32, i32
  }
  func.func @transform_3(%arg0: i32, %arg1: i32) -> (i32, i32) {
    %c0_i32 = arith.constant 0 : i32
    return %arg1, %arg0 : i32, i32
  }
  func.func @transform_4(%arg0: i32, %arg1: i32) -> (i32, i32) {
    %c0_i32 = arith.constant 0 : i32
    return %arg1, %arg0 : i32, i32
  }
}

module attributes {stable_mosaic.version = 11 : i64} {
  func.func @_fc_lif_kernel(%arg0: i32, %arg1: i32, %arg2: memref<4x128x2xbf16, #tpu.memory_space<vmem>>, %arg3: memref<10x128xbf16, #tpu.memory_space<vmem>>, %arg4: memref<10x1xf32, #tpu.memory_space<vmem>>, %arg5: memref<40x2xbf16, #tpu.memory_space<vmem>>, %arg6: memref<40x2xf32, #tpu.memory_space<vmem>>, %arg7: memref<10x2xf32, #tpu.memory_space<vmem>>) attributes {dimension_semantics = [#tpu.dimension_semantics<parallel>, #tpu.dimension_semantics<arbitrary>], iteration_bounds = array<i64: 1, 1>, scalar_prefetch = 0 : i64, scratch_operands = 1 : i64, tpu.core_type = #tpu.core_type<tc>, window_params = [{transform_indices = @transform_0, window_bounds = array<i64: 4, 128, 2>}, {pipeline_mode = #tpu.pipeline_mode<synchronous>, transform_indices = @transform_1, window_bounds = array<i64: 10, 128>}, {pipeline_mode = #tpu.pipeline_mode<synchronous>, transform_indices = @transform_2, window_bounds = array<i64: 10, 1>}, {transform_indices = @transform_3, window_bounds = array<i64: 40, 2>}, {transform_indices = @transform_4, window_bounds = array<i64: 40, 2>}]} {
    %c0_i32 = arith.constant 0 : i32
    %0 = arith.cmpi eq, %arg1, %c0_i32 : i32
    %1 = arith.extui %0 : i1 to i32
    %c0_i32_0 = arith.constant 0 : i32
    %2 = arith.cmpi ne, %1, %c0_i32_0 : i32
    scf.if %2 {
      %cst_61 = arith.constant 0.000000e+00 : f32
      %93 = vector.broadcast %cst_61 : f32 to vector<10x2xf32>
      %c0_62 = arith.constant 0 : index
      %c0_63 = arith.constant 0 : index
      %94 = vector.load %arg7[%c0_62, %c0_63] : memref<10x2xf32, #tpu.memory_space<vmem>>, vector<10x2xf32>
      tpu.vector_store %arg7[%c0_62, %c0_63], %93 {strides = array<i32>} : memref<10x2xf32, #tpu.memory_space<vmem>>, vector<10x2xf32>,
    } else {
    }
    %c0 = arith.constant 0 : index
    %c0_1 = arith.constant 0 : index
    %3 = vector.load %arg3[%c0, %c0_1] : memref<10x128xbf16, #tpu.memory_space<vmem>>, vector<10x128xbf16>
    %c0_2 = arith.constant 0 : index
    %c0_3 = arith.constant 0 : index
    %4 = vector.load %arg4[%c0_2, %c0_3] : memref<10x1xf32, #tpu.memory_space<vmem>>, vector<10x1xf32>
    %5 = vector.shape_cast %4 : vector<10x1xf32> to vector<10x1xf32>
    %6 = vector.broadcast %5 : vector<10x1xf32> to vector<10x2xf32>
    %c0_4 = arith.constant 0 : index
    %c0_5 = arith.constant 0 : index
    %7 = vector.load %arg7[%c0_4, %c0_5] : memref<10x2xf32, #tpu.memory_space<vmem>>, vector<10x2xf32>
    %c0_6 = arith.constant 0 : index
    %c0_7 = arith.constant 0 : index
    %c0_8 = arith.constant 0 : index
    %8 = vector.load %arg2[%c0_6, %c0_7, %c0_8] : memref<4x128x2xbf16, #tpu.memory_space<vmem>>, vector<1x128x2xbf16>
    %9 = vector.shape_cast %8 : vector<1x128x2xbf16> to vector<128x2xbf16>
    %cst = arith.constant dense<0.000000e+00> : vector<10x2xf32>
    %10 = tpu.matmul %3, %9, %cst {dimension_numbers = #tpu.dot_dimension_numbers<[1], [0], [0], [1], [0, 0, 1, 1], [], []>} : vector<10x128xbf16>, vector<128x2xbf16>, vector<10x2xf32> -> vector<10x2xf32>
    %11 = arith.addf %10, %6 : vector<10x2xf32>
    %cst_9 = arith.constant 1.000000e+00 : f32
    %12 = vector.broadcast %cst_9 : f32 to vector<10x2xf32>
    %13 = arith.cmpf ogt, %7, %12 : vector<10x2xf32>
    %cst_10 = arith.constant 1.000000e+00 : f32
    %cst_11 = arith.constant 0.000000e+00 : f32
    %14 = vector.broadcast %cst_10 : f32 to vector<10x2xf32>
    %15 = vector.broadcast %cst_11 : f32 to vector<10x2xf32>
    %16 = arith.select %13, %14, %15 : vector<10x2xi1>, vector<10x2xf32>
    %cst_12 = arith.constant 0.899999976 : f32
    %17 = vector.broadcast %cst_12 : f32 to vector<10x2xf32>
    %18 = arith.mulf %17, %7 : vector<10x2xf32>
    %19 = arith.addf %18, %11 : vector<10x2xf32>
    %20 = arith.subf %19, %16 : vector<10x2xf32>
    %cst_13 = arith.constant 1.000000e+00 : f32
    %21 = vector.broadcast %cst_13 : f32 to vector<10x2xf32>
    %22 = arith.cmpf ogt, %20, %21 : vector<10x2xf32>
    %cst_14 = arith.constant 1.000000e+00 : f32
    %cst_15 = arith.constant 0.000000e+00 : f32
    %23 = vector.broadcast %cst_14 : f32 to vector<10x2xf32>
    %24 = vector.broadcast %cst_15 : f32 to vector<10x2xf32>
    %25 = arith.select %22, %23, %24 : vector<10x2xi1>, vector<10x2xf32>
    %26 = arith.truncf %25 : vector<10x2xf32> to vector<10x2xbf16>
    %c0_16 = arith.constant 0 : index
    %c0_17 = arith.constant 0 : index
    %27 = vector.load %arg5[%c0_16, %c0_17] : memref<40x2xbf16, #tpu.memory_space<vmem>>, vector<10x2xbf16>
    tpu.vector_store %arg5[%c0_16, %c0_17], %26 {strides = array<i32>} : memref<40x2xbf16, #tpu.memory_space<vmem>>, vector<10x2xbf16>,
    %c0_18 = arith.constant 0 : index
    %c0_19 = arith.constant 0 : index
    %28 = vector.load %arg6[%c0_18, %c0_19] : memref<40x2xf32, #tpu.memory_space<vmem>>, vector<10x2xf32>
    tpu.vector_store %arg6[%c0_18, %c0_19], %20 {strides = array<i32>} : memref<40x2xf32, #tpu.memory_space<vmem>>, vector<10x2xf32>,
    %c1 = arith.constant 1 : index
    %c0_20 = arith.constant 0 : index
    %c0_21 = arith.constant 0 : index
    %29 = vector.load %arg2[%c1, %c0_20, %c0_21] : memref<4x128x2xbf16, #tpu.memory_space<vmem>>, vector<1x128x2xbf16>
    %30 = vector.shape_cast %29 : vector<1x128x2xbf16> to vector<128x2xbf16>
    %cst_22 = arith.constant dense<0.000000e+00> : vector<10x2xf32>
    %31 = tpu.matmul %3, %30, %cst_22 {dimension_numbers = #tpu.dot_dimension_numbers<[1], [0], [0], [1], [0, 0, 1, 1], [], []>} : vector<10x128xbf16>, vector<128x2xbf16>, vector<10x2xf32> -> vector<10x2xf32>
    %32 = arith.addf %31, %6 : vector<10x2xf32>
    %cst_23 = arith.constant 1.000000e+00 : f32
    %33 = vector.broadcast %cst_23 : f32 to vector<10x2xf32>
    %34 = arith.cmpf ogt, %20, %33 : vector<10x2xf32>
    %cst_24 = arith.constant 1.000000e+00 : f32
    %cst_25 = arith.constant 0.000000e+00 : f32
    %35 = vector.broadcast %cst_24 : f32 to vector<10x2xf32>
    %36 = vector.broadcast %cst_25 : f32 to vector<10x2xf32>
    %37 = arith.select %34, %35, %36 : vector<10x2xi1>, vector<10x2xf32>
    %cst_26 = arith.constant 0.899999976 : f32
    %38 = vector.broadcast %cst_26 : f32 to vector<10x2xf32>
    %39 = arith.mulf %38, %20 : vector<10x2xf32>
    %40 = arith.addf %39, %32 : vector<10x2xf32>
    %41 = arith.subf %40, %37 : vector<10x2xf32>
    %cst_27 = arith.constant 1.000000e+00 : f32
    %42 = vector.broadcast %cst_27 : f32 to vector<10x2xf32>
    %43 = arith.cmpf ogt, %41, %42 : vector<10x2xf32>
    %cst_28 = arith.constant 1.000000e+00 : f32
    %cst_29 = arith.constant 0.000000e+00 : f32
    %44 = vector.broadcast %cst_28 : f32 to vector<10x2xf32>
    %45 = vector.broadcast %cst_29 : f32 to vector<10x2xf32>
    %46 = arith.select %43, %44, %45 : vector<10x2xi1>, vector<10x2xf32>
    %47 = arith.truncf %46 : vector<10x2xf32> to vector<10x2xbf16>
    %c10 = arith.constant 10 : index
    %c0_30 = arith.constant 0 : index
    %48 = vector.load %arg5[%c10, %c0_30] : memref<40x2xbf16, #tpu.memory_space<vmem>>, vector<10x2xbf16>
    tpu.vector_store %arg5[%c10, %c0_30], %47 {strides = array<i32>} : memref<40x2xbf16, #tpu.memory_space<vmem>>, vector<10x2xbf16>,
    %c10_31 = arith.constant 10 : index
    %c0_32 = arith.constant 0 : index
    %49 = vector.load %arg6[%c10_31, %c0_32] : memref<40x2xf32, #tpu.memory_space<vmem>>, vector<10x2xf32>
    tpu.vector_store %arg6[%c10_31, %c0_32], %41 {strides = array<i32>} : memref<40x2xf32, #tpu.memory_space<vmem>>, vector<10x2xf32>,
    %c2 = arith.constant 2 : index
    %c0_33 = arith.constant 0 : index
    %c0_34 = arith.constant 0 : index
    %50 = vector.load %arg2[%c2, %c0_33, %c0_34] : memref<4x128x2xbf16, #tpu.memory_space<vmem>>, vector<1x128x2xbf16>
    %51 = vector.shape_cast %50 : vector<1x128x2xbf16> to vector<128x2xbf16>
    %cst_35 = arith.constant dense<0.000000e+00> : vector<10x2xf32>
    %52 = tpu.matmul %3, %51, %cst_35 {dimension_numbers = #tpu.dot_dimension_numbers<[1], [0], [0], [1], [0, 0, 1, 1], [], []>} : vector<10x128xbf16>, vector<128x2xbf16>, vector<10x2xf32> -> vector<10x2xf32>
    %53 = arith.addf %52, %6 : vector<10x2xf32>
    %cst_36 = arith.constant 1.000000e+00 : f32
    %54 = vector.broadcast %cst_36 : f32 to vector<10x2xf32>
    %55 = arith.cmpf ogt, %41, %54 : vector<10x2xf32>
    %cst_37 = arith.constant 1.000000e+00 : f32
    %cst_38 = arith.constant 0.000000e+00 : f32
    %56 = vector.broadcast %cst_37 : f32 to vector<10x2xf32>
    %57 = vector.broadcast %cst_38 : f32 to vector<10x2xf32>
    %58 = arith.select %55, %56, %57 : vector<10x2xi1>, vector<10x2xf32>
    %cst_39 = arith.constant 0.899999976 : f32
    %59 = vector.broadcast %cst_39 : f32 to vector<10x2xf32>
    %60 = arith.mulf %59, %41 : vector<10x2xf32>
    %61 = arith.addf %60, %53 : vector<10x2xf32>
    %62 = arith.subf %61, %58 : vector<10x2xf32>
    %cst_40 = arith.constant 1.000000e+00 : f32
    %63 = vector.broadcast %cst_40 : f32 to vector<10x2xf32>
    %64 = arith.cmpf ogt, %62, %63 : vector<10x2xf32>
    %cst_41 = arith.constant 1.000000e+00 : f32
    %cst_42 = arith.constant 0.000000e+00 : f32
    %65 = vector.broadcast %cst_41 : f32 to vector<10x2xf32>
    %66 = vector.broadcast %cst_42 : f32 to vector<10x2xf32>
    %67 = arith.select %64, %65, %66 : vector<10x2xi1>, vector<10x2xf32>
    %68 = arith.truncf %67 : vector<10x2xf32> to vector<10x2xbf16>
    %c20 = arith.constant 20 : index
    %c0_43 = arith.constant 0 : index
    %69 = vector.load %arg5[%c20, %c0_43] : memref<40x2xbf16, #tpu.memory_space<vmem>>, vector<10x2xbf16>
    tpu.vector_store %arg5[%c20, %c0_43], %68 {strides = array<i32>} : memref<40x2xbf16, #tpu.memory_space<vmem>>, vector<10x2xbf16>,
    %c20_44 = arith.constant 20 : index
    %c0_45 = arith.constant 0 : index
    %70 = vector.load %arg6[%c20_44, %c0_45] : memref<40x2xf32, #tpu.memory_space<vmem>>, vector<10x2xf32>
    tpu.vector_store %arg6[%c20_44, %c0_45], %62 {strides = array<i32>} : memref<40x2xf32, #tpu.memory_space<vmem>>, vector<10x2xf32>,
    %c3 = arith.constant 3 : index
    %c0_46 = arith.constant 0 : index
    %c0_47 = arith.constant 0 : index
    %71 = vector.load %arg2[%c3, %c0_46, %c0_47] : memref<4x128x2xbf16, #tpu.memory_space<vmem>>, vector<1x128x2xbf16>
    %72 = vector.shape_cast %71 : vector<1x128x2xbf16> to vector<128x2xbf16>
    %cst_48 = arith.constant dense<0.000000e+00> : vector<10x2xf32>
    %73 = tpu.matmul %3, %72, %cst_48 {dimension_numbers = #tpu.dot_dimension_numbers<[1], [0], [0], [1], [0, 0, 1, 1], [], []>} : vector<10x128xbf16>, vector<128x2xbf16>, vector<10x2xf32> -> vector<10x2xf32>
    %74 = arith.addf %73, %6 : vector<10x2xf32>
    %cst_49 = arith.constant 1.000000e+00 : f32
    %75 = vector.broadcast %cst_49 : f32 to vector<10x2xf32>
    %76 = arith.cmpf ogt, %62, %75 : vector<10x2xf32>
    %cst_50 = arith.constant 1.000000e+00 : f32
    %cst_51 = arith.constant 0.000000e+00 : f32
    %77 = vector.broadcast %cst_50 : f32 to vector<10x2xf32>
    %78 = vector.broadcast %cst_51 : f32 to vector<10x2xf32>
    %79 = arith.select %76, %77, %78 : vector<10x2xi1>, vector<10x2xf32>
    %cst_52 = arith.constant 0.899999976 : f32
    %80 = vector.broadcast %cst_52 : f32 to vector<10x2xf32>
    %81 = arith.mulf %80, %62 : vector<10x2xf32>
    %82 = arith.addf %81, %74 : vector<10x2xf32>
    %83 = arith.subf %82, %79 : vector<10x2xf32>
    %cst_53 = arith.constant 1.000000e+00 : f32
    %84 = vector.broadcast %cst_53 : f32 to vector<10x2xf32>
    %85 = arith.cmpf ogt, %83, %84 : vector<10x2xf32>
    %cst_54 = arith.constant 1.000000e+00 : f32
    %cst_55 = arith.constant 0.000000e+00 : f32
    %86 = vector.broadcast %cst_54 : f32 to vector<10x2xf32>
    %87 = vector.broadcast %cst_55 : f32 to vector<10x2xf32>
    %88 = arith.select %85, %86, %87 : vector<10x2xi1>, vector<10x2xf32>
    %89 = arith.truncf %88 : vector<10x2xf32> to vector<10x2xbf16>
    %c30 = arith.constant 30 : index
    %c0_56 = arith.constant 0 : index
    %90 = vector.load %arg5[%c30, %c0_56] : memref<40x2xbf16, #tpu.memory_space<vmem>>, vector<10x2xbf16>
    tpu.vector_store %arg5[%c30, %c0_56], %89 {strides = array<i32>} : memref<40x2xbf16, #tpu.memory_space<vmem>>, vector<10x2xbf16>,
    %c30_57 = arith.constant 30 : index
    %c0_58 = arith.constant 0 : index
    %91 = vector.load %arg6[%c30_57, %c0_58] : memref<40x2xf32, #tpu.memory_space<vmem>>, vector<10x2xf32>
    tpu.vector_store %arg6[%c30_57, %c0_58], %83 {strides = array<i32>} : memref<40x2xf32, #tpu.memory_space<vmem>>, vector<10x2xf32>,
    %c0_59 = arith.constant 0 : index
    %c0_60 = arith.constant 0 : index
    %92 = vector.load %arg7[%c0_59, %c0_60] : memref<10x2xf32, #tpu.memory_space<vmem>>, vector<10x2xf32>
    tpu.vector_store %arg7[%c0_59, %c0_60], %83 {strides = array<i32>} : memref<10x2xf32, #tpu.memory_space<vmem>>, vector<10x2xf32>,
    return
  }
  func.func @transform_0(%arg0: i32, %arg1: i32) -> (i32, i32, i32) {
    %c0_i32 = arith.constant 0 : i32
    %c0_i32_0 = arith.constant 0 : i32
    return %arg1, %c0_i32, %arg0 : i32, i32, i32
  }
  func.func @transform_1(%arg0: i32, %arg1: i32) -> (i32, i32) {
    %c0_i32 = arith.constant 0 : i32
    %c0_i32_0 = arith.constant 0 : i32
    %c0_i32_1 = arith.constant 0 : i32
    return %c0_i32, %c0_i32_0 : i32, i32
  }
  func.func @transform_2(%arg0: i32, %arg1: i32) -> (i32, i32) {
    %c0_i32 = arith.constant 0 : i32
    %c0_i32_0 = arith.constant 0 : i32
    %c0_i32_1 = arith.constant 0 : i32
    return %c0_i32, %c0_i32_0 : i32, i32
  }
  func.func @transform_3(%arg0: i32, %arg1: i32) -> (i32, i32) {
    %c0_i32 = arith.constant 0 : i32
    return %arg1, %arg0 : i32, i32
  }
  func.func @transform_4(%arg0: i32, %arg1: i32) -> (i32, i32) {
    %c0_i32 = arith.constant 0 : i32
    return %arg1, %arg0 : i32, i32
  }
}

</mosaic_0001>

<bundles_post_ra>
// kernel: net_betas_forward.3
= control target key start
LH: loop header
LB: loop body
LE: loop exit
PB: predicated region body
PF: predicated region fallthrough
CT: control target
= control target key end

     0   :  { %vm140_vm0 = vcmask 1043456   ;;  %vm141_vm1 = vcmask 1044480   ;;  %v2102_v1 = vmov 65535   ;;  %v2103_v3 = vmov 0   ;;  %s2751_s0 = inlined_call_operand.vmem [shape: bf16[4,25,1152], index: 0, kind: input, shape index: {}]   ;;  %s2752_s1 = inlined_call_operand.vmem [shape: bf16[4,25], index: 1, kind: input, shape index: {}]   ;;  %s2753_s2 = inlined_call_operand.vmem [shape: f32[4,1], index: 2, kind: input, shape index: {}]   ;;  %s2754_s4 = inlined_call_operand.vmem [shape: f32[16,288], index: 4, kind: output, shape index: {1}]   ;;  %s2755_s3 = inlined_call_operand.vmem [shape: bf16[16,288], index: 3, kind: output, shape index: {0}]  }
   0x1   :  { %v1997_v0 = vld [vmem:[%s2751_s0 + $0x4] ss:$36 sps:$4 sm:$0xff]   ;;  %v142_v2 = vsel %vm140_vm0, 4294967295, %v2102_v1  ;;  %203 = vmatprep.mubr.bf16.mxu0 %v2103_v3  ;;  %244 = vmatprep.mubr.bf16.mxu1 %v2103_v3  ;;  %v1999_v4 = vld [vmem:[%s2751_s0 + $0xc] ss:$36 sps:$4 sm:$0xff]   ;;  %vm136_vm2 = vcmask 203776  }
   0x2   :  { %1996 = vset.pattern.permute.xlu0 %v2103_v3  ;;  %171 = vmatprep.subr.bf16.mxu0 %v1997_v0  ;;  %v2001_v5 = vld [vmem:[%s2751_s0] ss:$36 sps:$4 sm:$0xff]   ;;  %v2002_v6 = vld [vmem:[%s2751_s0 + $0x8] ss:$36 sps:$4 sm:$0xff]   ;;  %v2148_v7 = vsel %vm141_vm1, %v142_v2, 0  ;;  %v2104_v35 = vmov 0.0  }
   0x3   :  { %212 = vmatprep.subr.bf16.mxu1 %v1999_v4  ;;  %v2003_v8 = vld [vmem:[%s2751_s0 + $0x4c] ss:$36 sps:$4 sm:$0x1f]   ;;  %172 = vmatpush1.bf16.msra.mxu0 %v2001_v5  ;;  %v2005_v9 = vld [vmem:[%s2751_s0 + $0x54] ss:$36 sps:$4 sm:$0x1f]  }
   0x4   :  { %213 = vmatpush1.bf16.msra.mxu1 %v2002_v6  ;;  %v148_v10 = vand.u32 %v2003_v8, %v2148_v7  ;;  %v2007_v11 = vld [vmem:[%s2751_s0 + $0x48] ss:$36 sps:$4 sm:$0x1f]   ;;  %v2008_v12 = vld [vmem:[%s2751_s0 + $0x50] ss:$36 sps:$4 sm:$0x1f]   ;;  %v154_v13 = vand.u32 %v2005_v9, %v2148_v7 }
   0x5   :  { %v145_v14 = vand.u32 %v2007_v11, %v2148_v7  ;;  %v151_v15 = vand.u32 %v2008_v12, %v2148_v7  ;;  %v2169_v16 = vld [vmem:[%s2752_s1] sm:$0x3]  ;;  %v2009_v17 = vld [vmem:[%s2751_s0 + $0x10] ss:$36 sps:$4 sm:$0xff]   ;;  %v2012_v19 = vld [vmem:[%s2751_s0 + $0x18] ss:$36 sps:$4 sm:$0xff]  }
   0x6   :  { %173 = vmatprep.subr.bf16.mxu0 %v148_v10  ;;  %v2011_v18 = vld [vmem:[%s2751_s0 + $0x14] ss:$36 sps:$4 sm:$0xff]   ;;  %214 = vmatprep.subr.bf16.mxu1 %v154_v13  ;;  %v2014_v20 = vld [vmem:[%s2751_s0 + $0x1c] ss:$36 sps:$4 sm:$0xff]   ;;  %v2034_v40 = vld [vmem:[%s2751_s0 + $0xa4] ss:$36 sps:$4 sm:$0xff]  }
   0x7   :  { %174 = vmatpush1.bf16.msra.mxu0 %v145_v14  ;;  %v2015_v21 = vld [vmem:[%s2751_s0 + $0x58] ss:$36 sps:$4 sm:$0x1f]   ;;  %v2018_v23 = vld [vmem:[%s2751_s0 + $0x60] ss:$36 sps:$4 sm:$0x1f]  }
   0x8   :  { %215 = vmatpush1.bf16.msra.mxu1 %v151_v15  ;;  %253 = vmatprep.subr.bf16.mxu0 %v2011_v18  ;;  %v2017_v22 = vld [vmem:[%s2751_s0 + $0x5c] ss:$36 sps:$4 sm:$0x1f]   ;;  %v2020_v24 = vld [vmem:[%s2751_s0 + $0x64] ss:$36 sps:$4 sm:$0x1f]   ;;  %v157_v27 = vand.u32 %v2015_v21, %v2148_v7  ;;  %v163_v28 = vand.u32 %v2018_v23, %v2148_v7 }
   0x9   :  { %294 = vmatprep.subr.bf16.mxu1 %v2014_v20  ;;  %v160_v25 = vand.u32 %v2017_v22, %v2148_v7  ;;  %v166_v26 = vand.u32 %v2020_v24, %v2148_v7  ;;  %v2023_v29 = vld [vmem:[%s2751_s0 + $0x94] ss:$36 sps:$4 sm:$0xff]   ;;  %v2027_v31 = vld [vmem:[%s2751_s0 + $0xdc] ss:$36 sps:$4 sm:$0x1f]   ;;  %vm2105_vm3 = vmmov 0  }
   0xa   :  { %1796 = vmatmul.mubr.msk.bf16.vlgmr.msra.gmra.mrb[0].mxu0 %vm136_vm2, %v2169_v16  ;;  %v2021_v30 = vld [vmem:[%s2751_s0 + $0x90] ss:$36 sps:$4 sm:$0xff]   ;;  %v2025_v32 = vld [vmem:[%s2751_s0 + $0xd8] ss:$36 sps:$4 sm:$0x1f]   ;;  %v583_v36 = vand.u32 %v2027_v31, %v2148_v7  ;;  %vm22_vm4 = vcmask 257024  }
   0xb   :  { %1797 = vmatmul.mubr.msk.bf16.vlgmr.msra.gmra.mrb[0].mxu1 %vm136_vm2, %v2169_v16  ;;  %254 = vmatpush1.bf16.msra.mxu0 %v2009_v17  ;;  %v2024_v33 = vld [vmem:[%s2751_s0 + $0x20] ss:$36 sps:$4 sm:$0xff]   ;;  %v2028_v34 = vld [vmem:[%s2751_s0 + $0x68] ss:$36 sps:$4 sm:$0x1f]   ;;  %v580_v39 = vand.u32 %v2025_v32, %v2148_v7  ;;  %vm384_vm5 = vcmask 785408  }
   0xc   :  { %295 = vmatpush1.bf16.msra.mxu1 %v2012_v19  ;;  %255 = vmatprep.subr.bf16.mxu0 %v160_v25  ;;  %v2031_v37 = vld [vmem:[%s2751_s0 + $0x9c] ss:$36 sps:$4 sm:$0xff]   ;;  %v169_v38 = vand.u32 %v2028_v34, %v2148_v7  ;;  %v2037_v41 = vld [vmem:[%s2751_s0 + $0xe4] ss:$36 sps:$4 sm:$0x1f]   ;;  %vm419_vm6 = vcmask 523264  }
   0xd   :  { %285 = vmatprep.mubr.bf16.mxu0 %v2103_v3  ;;  %296 = vmatprep.subr.bf16.mxu1 %v166_v26  ;;  %v2040_v42 = vld [vmem:[%s2751_s0 + $0xec] ss:$36 sps:$4 sm:$0x1f]   ;;  %v2029_v43 = vld [vmem:[%s2751_s0 + $0x98] ss:$36 sps:$4 sm:$0xff]   ;;  %v589_v47 = vand.u32 %v2037_v41, %v2148_v7  ;;  %vm466_vm9 = vcmask 254976  }
   0xe   :  { %326 = vmatprep.mubr.bf16.mxu1 %v2103_v3  ;;  %v2032_v44 = vld [vmem:[%s2751_s0 + $0xa0] ss:$36 sps:$4 sm:$0xff]   ;;  %v2038_v46 = vld [vmem:[%s2751_s0 + $0xe8] ss:$36 sps:$4 sm:$0x1f]   ;;  %v595_v48 = vand.u32 %v2040_v42, %v2148_v7  ;;  %vm907_vm11 = vcmask 261124  }
   0xf   :  { %256 = vmatpush1.bf16.msra.mxu0 %v157_v27  ;;  %v2035_v45 = vld [vmem:[%s2751_s0 + $0xe0] ss:$36 sps:$4 sm:$0x1f]   ;;  %v592_v50 = vand.u32 %v2038_v46, %v2148_v7  ;;  %v2043_v51 = vld [vmem:[%s2751_s0 + $0xac] ss:$36 sps:$4 sm:$0xff]   ;;  %vm897_vm13 = vcmask 257026  }
  0x10   :  { %297 = vmatpush1.bf16.msra.mxu1 %v163_v28  ;;  %1958 = vmatprep.subr.bf16.mxu0 %v2104_v35  ;;  %v586_v49 = vand.u32 %v2035_v45, %v2148_v7  ;;  %v2047_v52 = vld [vmem:[%s2751_s0 + $0xf4] ss:$36 sps:$4 sm:$0x1f]   ;;  %v2041_v53 = vld [vmem:[%s2751_s0 + $0xa8] ss:$36 sps:$4 sm:$0xff]  }
  0x11   :  { %606 = vmatprep.subr.bf16.mxu1 %v2023_v29  ;;  %v2045_v54 = vld [vmem:[%s2751_s0 + $0xf0] ss:$36 sps:$4 sm:$0x1f]   ;;  %v2048_v56 = vld [vmem:[%s2751_s0 + $0xf8] ss:$36 sps:$4 sm:$0x1f]   ;;  %v601_v57 = vand.u32 %v2047_v52, %v2148_v7 }
  0x12   :  { %1798 = vmatmul.mubr.msk.bf16.vlgmr.msra.gmra.mrb[4].mxu0 %vm136_vm2, %v2169_v16  ;;  %v2044_v55 = vld [vmem:[%s2751_s0 + $0xb0] ss:$36 sps:$4 sm:$0xff]   ;;  %v2051_v58 = vld [vmem:[%s2751_s0 + $0x124] ss:$36 sps:$4 sm:$0xff]   ;;  %v598_v60 = vand.u32 %v2045_v54, %v2148_v7  ;;  %v604_v61 = vand.u32 %v2048_v56, %v2148_v7  ;;  %v2066_v12 = vld [vmem:[%s2751_s0 + $0x13c] ss:$36 sps:$4 sm:$0xff]  }
  0x13   :  { %1799 = vmatmul.mubr.msk.bf16.vlgmr.msra.gmra.mrb[4].mxu1 %vm136_vm2, %v2169_v16  ;;  %1959 = vmatpush3.bf16.msra.mxu0 %v2024_v33  ;;  %v2054_v59 = vld [vmem:[%s2751_s0 + $0x12c] ss:$36 sps:$4 sm:$0xff]   ;;  %v2060_v63 = vld [vmem:[%s2751_s0 + $0x174] ss:$36 sps:$4 sm:$0x1f]  }
  0x14   :  { %607 = vmatpush1.bf16.msra.mxu1 %v2021_v30  ;;  %1960 = vmatprep.subr.bf16.mxu0 %v2104_v35  ;;  %v2057_v62 = vld [vmem:[%s2751_s0 + $0x16c] ss:$36 sps:$4 sm:$0x1f]   ;;  %v2049_v0 = vld [vmem:[%s2751_s0 + $0x120] ss:$36 sps:$4 sm:$0xff]   ;;  %v1023_v6 = vand.u32 %v2060_v63, %v2148_v7 }
  0x15   :  { %608 = vmatprep.subr.bf16.mxu1 %v583_v36  ;;  %1962 = vmatprep.mubr.msk.bf16.mxu0 %vm2105_vm3, %v2104_v35  ;;  %v2052_v1 = vld [vmem:[%s2751_s0 + $0x128] ss:$36 sps:$4 sm:$0xff]   ;;  %v2058_v4 = vld [vmem:[%s2751_s0 + $0x170] ss:$36 sps:$4 sm:$0x1f]   ;;  %v1017_v5 = vand.u32 %v2057_v62, %v2148_v7 }
  0x16   :  { %638 = vmatprep.mubr.bf16.mxu1 %v2103_v3  ;;  %v2055_v2 = vld [vmem:[%s2751_s0 + $0x168] ss:$36 sps:$4 sm:$0x1f]   ;;  %v2063_v8 = vld [vmem:[%s2751_s0 + $0x134] ss:$36 sps:$4 sm:$0xff]   ;;  %v1020_v11 = vand.u32 %v2058_v4, %v2148_v7 }
  0x17   :  { %1961 = vmatpush3.bf16.msra.mxu0 %v169_v38  ;;  %v2069_v9 = vld [vmem:[%s2751_s0 + $0x17c] ss:$36 sps:$4 sm:$0x1f]   ;;  %v1014_v10 = vand.u32 %v2055_v2, %v2148_v7  ;;  %v2072_v13 = vld [vmem:[%s2751_s0 + $0x184] ss:$36 sps:$4 sm:$0x1f]  }
  0x18   :  { %609 = vmatpush1.bf16.msra.mxu1 %v580_v39  ;;  %647 = vmatprep.subr.bf16.mxu0 %v2031_v37  ;;  %v2346_v14 = vld [vmem:[%s2751_s0 + $0x200] ss:$36 sps:$4 sm:$0x1f]   ;;  %v2061_v15 = vld [vmem:[%s2751_s0 + $0x130] ss:$36 sps:$4 sm:$0xff]   ;;  %v1029_v22 = vand.u32 %v2069_v9, %v2148_v7  ;;  %v1035_v24 = vand.u32 %v2072_v13, %v2148_v7 }
  0x19   :  { %688 = vmatprep.subr.bf16.mxu1 %v2034_v40  ;;  %v2067_v17 = vld [vmem:[%s2751_s0 + $0x178] ss:$36 sps:$4 sm:$0x1f]   ;;  %v1447_v18 = vand.u32 %v2346_v14, %v2148_v7  ;;  %v2361_v19 = vld [vmem:[%s2751_s0 + $0x208] ss:$36 sps:$4 sm:$0x1f]  }
  0x1a   :  { %1963 = vmatmul.mubr.msk.bf16.vlgmr.msra.gmra.mrb[8].mxu0 %vm136_vm2, %v2169_v16  ;;  %v2366_v20 = vld [vmem:[%s2751_s0 + $0x20c] ss:$36 sps:$4 sm:$0x1f]   ;;  %v2064_v21 = vld [vmem:[%s2751_s0 + $0x138] ss:$36 sps:$4 sm:$0xff]   ;;  %v1453_v26 = vand.u32 %v2361_v19, %v2148_v7  ;;  %v1026_v30 = vand.u32 %v2067_v17, %v2148_v7 }
  0x1b   :  { %1841 = vmatmul.mubr.msk.bf16.vlgmr.msra.gmra.mrb[8].mxu1 %vm136_vm2, %v2169_v16  ;;  %648 = vmatpush1.bf16.msra.mxu0 %v2029_v43  ;;  %v2070_v23 = vld [vmem:[%s2751_s0 + $0x180] ss:$36 sps:$4 sm:$0x1f]   ;;  %v1456_v25 = vand.u32 %v2366_v20, %v2148_v7  ;;  %v2383_v27 = vld [vmem:[%s2751_s0 + $0x210] ss:$36 sps:$4 sm:$0x1f]  }
  0x1c   :  { %689 = vmatpush1.bf16.msra.mxu1 %v2032_v44  ;;  %649 = vmatprep.subr.bf16.mxu0 %v589_v47  ;;  %v2388_v28 = vld [vmem:[%s2751_s0 + $0x214] ss:$36 sps:$4 sm:$0x1f]   ;;  %v1459_v29 = vand.u32 %v2383_v27, %v2148_v7  ;;  %v1032_v31 = vand.u32 %v2070_v23, %v2148_v7  ;;  %v2080_v36 = vld [vmem:[%s2751_s0 + $0x1fc] ss:$36 sps:$4 sm:$0x1f]  }
  0x1d   :  { %690 = vmatprep.subr.bf16.mxu1 %v595_v48  ;;  %679 = vmatprep.mubr.bf16.mxu0 %v2103_v3  ;;  %v1462_v32 = vand.u32 %v2388_v28, %v2148_v7  ;;  %v2100_v33 = vld [vmem:[%s2751_s0 + $0x218] ss:$36 sps:$4 sm:$0x1f]   ;;  %v2073_v38 = vld [vmem:[%s2751_s0 + $0x140] ss:$36 sps:$4 sm:$0xff]   ;;  %v1444_v42 = vand.u32 %v2080_v36, %v2148_v7 }
  0x1e   :  { %720 = vmatprep.mubr.bf16.mxu1 %v2103_v3  ;;  %v2076_v34 = vld [vmem:[%s2751_s0 + $0x1b4] ss:$36 sps:$4 sm:$0xff]   ;;  %v1465_v37 = vand.u32 %v2100_v33, %v2148_v7  ;;  %v2077_v40 = vld [vmem:[%s2751_s0 + $0x188] ss:$36 sps:$4 sm:$0x1f]  }
  0x1f   :  { %650 = vmatpush1.bf16.msra.mxu0 %v586_v49  ;;  %v2074_v39 = vld [vmem:[%s2751_s0 + $0x1b0] ss:$36 sps:$4 sm:$0xff]   ;;  %v2078_v41 = vld [vmem:[%s2751_s0 + $0x1f8] ss:$36 sps:$4 sm:$0x1f]   ;;  %v1038_v43 = vand.u32 %v2077_v40, %v2148_v7 }
  0x20   :  { %691 = vmatpush1.bf16.msra.mxu1 %v592_v50  ;;  %729 = vmatprep.subr.bf16.mxu0 %v2043_v51  ;;  %v1441_v44 = vand.u32 %v2078_v41, %v2148_v7  ;;  %v2083_v45 = vld [vmem:[%s2751_s0 + $0x1bc] ss:$36 sps:$4 sm:$0xff]   ;;  %v2086_v46 = vld [vmem:[%s2751_s0 + $0x1c4] ss:$36 sps:$4 sm:$0xff]   ;;  %v2095_v51 = vld [vmem:[%s2751_s0 + $0x1cc] ss:$36 sps:$4 sm:$0xff]  }
  0x21   :  { %1966 = vmatprep.subr.bf16.mxu1 %v2104_v35  ;;  %v2089_v47 = vld [vmem:[%s2751_s0 + $0x204] ss:$36 sps:$4 sm:$0x1f]   ;;  %v2081_v48 = vld [vmem:[%s2751_s0 + $0x1b8] ss:$36 sps:$4 sm:$0xff]  }
  0x22   :  { %1842 = vmatmul.mubr.msk.bf16.vlgmr.msra.gmra.mrb[12].mxu0 %vm136_vm2, %v2169_v16  ;;  %v2084_v49 = vld [vmem:[%s2751_s0 + $0x1c0] ss:$36 sps:$4 sm:$0xff]   ;;  %v1450_v50 = vand.u32 %v2089_v47, %v2148_v7  ;;  %v2093_v52 = vld [vmem:[%s2751_s0 + $0x1c8] ss:$36 sps:$4 sm:$0xff]   ;;  %23 = vst.msk [vmem:[#allocation2 + $0x8] sm:$0xf] %vm22_vm4, %v2104_v35 }
  0x23   :  { %1843 = vmatmul.mubr.msk.bf16.vlgmr.msra.gmra.mrb[12].mxu1 %vm136_vm2, %v2169_v16  ;;  %730 = vmatpush1.bf16.msra.mxu0 %v2041_v53  ;;  %v2099_v53 = vld [vmem:[%s2751_s0 + $0x1d0] ss:$36 sps:$4 sm:$0xff]   ;;  %s2106_s0 = smov 96  }
  0x24   :  { %1967 = vmatpush3.bf16.msra.mxu1 %v2044_v55  ;;  %731 = vmatprep.subr.bf16.mxu0 %v601_v57 }
  0x25   :  { %1968 = vmatprep.subr.bf16.mxu1 %v2104_v35  ;;  %761 = vmatprep.mubr.bf16.mxu0 %v2103_v3 }
  0x26   :  { %1970 = vmatprep.mubr.msk.bf16.mxu1 %vm2105_vm3, %v2104_v35 }
  0x27   :  { %732 = vmatpush1.bf16.msra.mxu0 %v598_v60 }
  0x28   :  { %1969 = vmatpush3.bf16.msra.mxu1 %v604_v61  ;;  %1040 = vmatprep.subr.bf16.mxu0 %v2051_v58 }
  0x29   :  { %1081 = vmatprep.subr.bf16.mxu1 %v2054_v59 }
  0x2a   :  { %1844 = vmatmul.mubr.msk.bf16.vlgmr.msra.gmra.mrb[16].mxu0 %vm136_vm2, %v2169_v16 }
  0x2b   :  { %1971 = vmatmul.mubr.msk.bf16.vlgmr.msra.gmra.mrb[16].mxu1 %vm136_vm2, %v2169_v16  ;;  %1041 = vmatpush1.bf16.msra.mxu0 %v2049_v0 }
  0x2c   :  { %1082 = vmatpush1.bf16.msra.mxu1 %v2052_v1  ;;  %1042 = vmatprep.subr.bf16.mxu0 %v1017_v5 }
  0x2d   :  { %1083 = vmatprep.subr.bf16.mxu1 %v1023_v6  ;;  %1072 = vmatprep.mubr.bf16.mxu0 %v2103_v3 }
  0x2e   :  { %1113 = vmatprep.mubr.bf16.mxu1 %v2103_v3 }
  0x2f   :  { %1043 = vmatpush1.bf16.msra.mxu0 %v1014_v10 }
  0x30   :  { %1084 = vmatpush1.bf16.msra.mxu1 %v1020_v11  ;;  %1122 = vmatprep.subr.bf16.mxu0 %v2063_v8 }
  0x31   :  { %1163 = vmatprep.subr.bf16.mxu1 %v2066_v12 }
  0x32   :  { %1886 = vmatmul.mubr.msk.bf16.vlgmr.msra.gmra.mrb[20].mxu0 %vm136_vm2, %v2169_v16 }
  0x33   :  { %1887 = vmatmul.mubr.msk.bf16.vlgmr.msra.gmra.mrb[20].mxu1 %vm136_vm2, %v2169_v16  ;;  %1123 = vmatpush1.bf16.msra.mxu0 %v2061_v15 }
  0x34   :  { %1164 = vmatpush1.bf16.msra.mxu1 %v2064_v21  ;;  %1124 = vmatprep.subr.bf16.mxu0 %v1029_v22 }
  0x35   :  { %1165 = vmatprep.subr.bf16.mxu1 %v1035_v24  ;;  %1154 = vmatprep.mubr.bf16.mxu0 %v2103_v3 }
  0x36   :  { %1195 = vmatprep.mubr.bf16.mxu1 %v2103_v3 }
  0x37   :  { %1125 = vmatpush1.bf16.msra.mxu0 %v1026_v30 }
  0x38   :  { %1166 = vmatpush1.bf16.msra.mxu1 %v1032_v31  ;;  %1974 = vmatprep.subr.bf16.mxu0 %v2104_v35 }
  0x39   :  { %1467 = vmatprep.subr.bf16.mxu1 %v2076_v34 }
  0x3a   :  { %1888 = vmatmul.mubr.msk.bf16.vlgmr.msra.gmra.mrb[24].mxu0 %vm136_vm2, %v2169_v16 }
  0x3b   :  { %1889 = vmatmul.mubr.msk.bf16.vlgmr.msra.gmra.mrb[24].mxu1 %vm136_vm2, %v2169_v16  ;;  %1975 = vmatpush3.bf16.msra.mxu0 %v2073_v38 }
  0x3c   :  { %1468 = vmatpush1.bf16.msra.mxu1 %v2074_v39  ;;  %1976 = vmatprep.subr.bf16.mxu0 %v2104_v35 }
  0x3d   :  { %1978 = vmatprep.mubr.msk.bf16.mxu0 %vm2105_vm3, %v2104_v35  ;;  %1469 = vmatprep.subr.bf16.mxu1 %v1444_v42 }
  0x3e   :  { %1499 = vmatprep.mubr.bf16.mxu1 %v2103_v3 }
  0x3f   :  { %1977 = vmatpush3.bf16.msra.mxu0 %v1038_v43 }
  0x40   :  { %1470 = vmatpush1.bf16.msra.mxu1 %v1441_v44  ;;  %1508 = vmatprep.subr.bf16.mxu0 %v2083_v45 }
  0x41   :  { %1549 = vmatprep.subr.bf16.mxu1 %v2086_v46 }
  0x42   :  { %1979 = vmatmul.mubr.msk.bf16.vlgmr.msra.gmra.mrb[28].mxu0 %vm136_vm2, %v2169_v16 }
  0x43   :  { %1931 = vmatmul.mubr.msk.bf16.vlgmr.msra.gmra.mrb[28].mxu1 %vm136_vm2, %v2169_v16  ;;  %1509 = vmatpush1.bf16.msra.mxu0 %v2081_v48 }
  0x44   :  { %1550 = vmatpush1.bf16.msra.mxu1 %v2084_v49  ;;  %1510 = vmatprep.subr.bf16.mxu0 %v1450_v50 }
  0x45   :  { %1540 = vmatprep.mubr.bf16.mxu0 %v2103_v3  ;;  %1551 = vmatprep.subr.bf16.mxu1 %v1456_v25 }
  0x46   :  { %1581 = vmatprep.mubr.bf16.mxu1 %v2103_v3 }
  0x47   :  { %1511 = vmatpush1.bf16.msra.mxu0 %v1447_v18 }
  0x48   :  { %1552 = vmatpush1.bf16.msra.mxu1 %v1453_v26  ;;  %1590 = vmatprep.subr.bf16.mxu0 %v2095_v51 }
  0x49   :  { %1982 = vmatprep.subr.bf16.mxu1 %v2104_v35 }
  0x4a   :  { %1932 = vmatmul.mubr.msk.bf16.vlgmr.msra.gmra.mrb[32].mxu0 %vm136_vm2, %v2169_v16 }
  0x4b   :  { %1933 = vmatmul.mubr.msk.bf16.vlgmr.msra.gmra.mrb[32].mxu1 %vm136_vm2, %v2169_v16  ;;  %1591 = vmatpush1.bf16.msra.mxu0 %v2093_v52 }
  0x4c   :  { %1983 = vmatpush3.bf16.msra.mxu1 %v2099_v53  ;;  %1592 = vmatprep.subr.bf16.mxu0 %v1462_v32 }
  0x4d   :  { %1622 = vmatprep.mubr.bf16.mxu0 %v2103_v3  ;;  %1984 = vmatprep.subr.bf16.mxu1 %v2104_v35 }
  0x4e   :  { %1986 = vmatprep.mubr.msk.bf16.mxu1 %vm2105_vm3, %v2104_v35 }
  0x4f   :  { %1593 = vmatpush1.bf16.msra.mxu0 %v1459_v29 }
  0x50   :  { %1985 = vmatpush3.bf16.msra.mxu1 %v1465_v37 }
  0x52   :  { %1934 = vmatmul.mubr.msk.bf16.vlgmr.msra.gmra.mrb[36].mxu0 %vm136_vm2, %v2169_v16 }
  0x53   :  { %1987 = vmatmul.mubr.msk.bf16.vlgmr.msra.gmra.mrb[36].mxu1 %vm136_vm2, %v2169_v16 }
  0xdd   :  { %v2486_v54 = vpop.f32.mrb[0].mxu0 }
  0xde   :  { %v2488_v55 = vpop.f32.mrb[0].mxu1  ;;  %v2490_v3 = vpop.f32.mrb[1].mxu0 }
  0xdf   :  { %v2492_v56 = vpop.f32.mrb[1].mxu1  ;;  %v209_v57 = vpop.f32.mrb[2].mxu0 }
  0xe0   :  { %v250_v58 = vpop.f32.mrb[2].mxu1  ;;  %v210_v59 = vpop.f32.mrb[3].mxu0 }
  0xe1   :  { %v251_v7 = vpop.f32.mrb[3].mxu1 }
  0xe5   :  { %v2494_v60 = vpop.f32.mrb[4].mxu0 }
  0xe6   :  { %v2496_v61 = vpop.f32.mrb[4].mxu1  ;;  %v2500_v16 = vpop.f32.mrb[5].mxu0 }
  0xe7   :  { %396 = vrot.lane.b32.xlu0 %v2496_v61, %s2106_s0  ;;  %v330_v62 = vpop.f32.mrb[5].mxu1  ;;  %v291_v63 = vpop.f32.mrb[6].mxu0 }
  0xe8   :  { %v332_v0 = vpop.f32.mrb[6].mxu1  ;;  %v292_v1 = vpop.f32.mrb[7].mxu0 }
  0xe9   :  { %v333_v2 = vpop.f32.mrb[7].mxu1 }
  0xeb   :  { %398 = vrot.lane.b32.xlu0 %v330_v62, %s2106_s0 }
  0xed   :  { %v369_v4 = vpop.f32.mrb[8].mxu0 }
  0xee   :  { %v2503_v5 = vpop.f32.mrb[8].mxu1  ;;  %400 = vrot.lane.b32.xlu1 %v369_v4, %s2106_s0  ;;  %v1964_v6 = vpop.f32.mrb[9].mxu0 }
  0xef   :  { %v2506_v8 = vpop.f32.mrb[9].mxu1  ;;  %v372_v9 = vpop.f32.mrb[10].mxu0 }
  0xf0   :  { %v644_v10 = vpop.f32.mrb[10].mxu1  ;;  %v1965_v11 = vpop.f32.mrb[11].mxu0 }
  0xf1   :  { %v645_v12 = vpop.f32.mrb[11].mxu1 }
  0xf5   :  { %v2508_v13 = vpop.f32.mrb[12].mxu0 }
  0xf6   :  { %v2510_v14 = vpop.f32.mrb[12].mxu1  ;;  %v2512_v15 = vpop.f32.mrb[13].mxu0 }
  0xf7   :  { %v2514_v17 = vpop.f32.mrb[13].mxu1  ;;  %v685_v18 = vpop.f32.mrb[14].mxu0 }
  0xf8   :  { %v726_v19 = vpop.f32.mrb[14].mxu1  ;;  %v686_v20 = vpop.f32.mrb[15].mxu0 }
  0xf9   :  { %v727_v21 = vpop.f32.mrb[15].mxu1  ;;  %v25_v20 = vld [vmem:[%s2753_s2] sm:$0xf]  ;;  %s2107_s2 = smov 64  }
  0xfd   :  { %v2516_v22 = vpop.f32.mrb[16].mxu0 }
  0xfe   :  { %v804_v23 = vpop.f32.mrb[16].mxu1  ;;  %830 = vrot.lane.b32.xlu1 %v2516_v22, %s2106_s0  ;;  %v765_v24 = vpop.f32.mrb[17].mxu0 }
  0xff   :  { %v1972_v25 = vpop.f32.mrb[17].mxu1  ;;  %832 = vrot.lane.b32.xlu0 %v765_v24, %s2106_s0  ;;  %v767_v26 = vpop.f32.mrb[18].mxu0 }
 0x100   :  { %v807_v27 = vpop.f32.mrb[18].mxu1  ;;  %v768_v28 = vpop.f32.mrb[19].mxu0 }
 0x101   :  { %v1973_v29 = vpop.f32.mrb[19].mxu1 }
 0x102   :  { %834 = vrot.lane.b32.xlu1 %v804_v23, %s2106_s0 }
 0x105   :  { %v2522_v30 = vpop.f32.mrb[20].mxu0 }
 0x106   :  { %v2524_v31 = vpop.f32.mrb[20].mxu1  ;;  %v2526_v32 = vpop.f32.mrb[21].mxu0 }
 0x107   :  { %v1117_v33 = vpop.f32.mrb[21].mxu1  ;;  %v1078_v34 = vpop.f32.mrb[22].mxu0 }
 0x108   :  { %v1119_v36 = vpop.f32.mrb[22].mxu1  ;;  %v1079_v37 = vpop.f32.mrb[23].mxu0 }
 0x109   :  { %v1120_v38 = vpop.f32.mrb[23].mxu1 }
 0x10d   :  { %v2528_v39 = vpop.f32.mrb[24].mxu0 }
 0x10e   :  { %v2530_v40 = vpop.f32.mrb[24].mxu1  ;;  %v2532_v41 = vpop.f32.mrb[25].mxu0 }
 0x10f   :  { %v1199_v42 = vpop.f32.mrb[25].mxu1  ;;  %1264 = vrot.lane.b32.xlu0 %v2530_v40, %s2106_s0  ;;  %v1160_v43 = vpop.f32.mrb[26].mxu0 }
 0x110   :  { %1266 = vrot.lane.b32.xlu1 %v1199_v42, %s2106_s0  ;;  %v1201_v44 = vpop.f32.mrb[26].mxu1  ;;  %v1161_v45 = vpop.f32.mrb[27].mxu0 }
 0x111   :  { %v1202_v46 = vpop.f32.mrb[27].mxu1 }
 0x115   :  { %v1238_v47 = vpop.f32.mrb[28].mxu0 }
 0x116   :  { %v2537_v48 = vpop.f32.mrb[28].mxu1  ;;  %1268 = vrot.lane.b32.xlu0 %v1238_v47, %s2106_s0  ;;  %v1980_v49 = vpop.f32.mrb[29].mxu0 }
 0x117   :  { %v2540_v50 = vpop.f32.mrb[29].mxu1  ;;  %v1241_v51 = vpop.f32.mrb[30].mxu0 }
 0x118   :  { %v1505_v52 = vpop.f32.mrb[30].mxu1  ;;  %v1981_v53 = vpop.f32.mrb[31].mxu0 }
 0x119   :  { %v1506_v57 = vpop.f32.mrb[31].mxu1 }
 0x11d   :  { %v2542_v58 = vpop.f32.mrb[32].mxu0 }
 0x11e   :  { %v2544_v59 = vpop.f32.mrb[32].mxu1  ;;  %v1544_v7 = vpop.f32.mrb[33].mxu0 }
 0x11f   :  { %v2546_v62 = vpop.f32.mrb[33].mxu1  ;;  %v1546_v63 = vpop.f32.mrb[34].mxu0 }
 0x120   :  { %v1587_v0 = vpop.f32.mrb[34].mxu1  ;;  %v1547_v1 = vpop.f32.mrb[35].mxu0 }
 0x121   :  { %v1588_v2 = vpop.f32.mrb[35].mxu1 }
 0x125   :  { %v2548_v4 = vpop.f32.mrb[36].mxu0 }
 0x126   :  { %v1665_v6 = vpop.f32.mrb[36].mxu1  ;;  %1691 = vrot.lane.b32.xlu1 %v2548_v4, %s2106_s0  ;;  %v1626_v9 = vpop.f32.mrb[37].mxu0 }
 0x127   :  { %v1988_v10 = vpop.f32.mrb[37].mxu1  ;;  %1693 = vrot.lane.b32.xlu0 %v1626_v9, %s2106_s0  ;;  %v1628_v11 = vpop.f32.mrb[38].mxu0 }
 0x128   :  { %v1668_v12 = vpop.f32.mrb[38].mxu1  ;;  %v1629_v18 = vpop.f32.mrb[39].mxu0  ;;  %v32_v10 = vld [vmem:[#allocation2 + $0x8] sm:$0xf] }
 0x129   :  { %v1989_v19 = vpop.f32.mrb[39].mxu1  ;;  %vm432_vm7 = vcmp.gt.f32.partialorder %v32_v10, 1.0 }
 0x12a   :  { %1695 = vrot.lane.b32.xlu1 %v1665_v6, %s2106_s0 }
 0x12b   :  { %28 = vperm.xlu0 %1996, %v25_v20  }
 0x12e   :  { %378 = vrot.lane.b32.xlu1 %v2488_v55, %s2106_s0 }
 0x12f   :  { %382 = vrot.lane.b32.xlu0 %v2494_v60, %s2106_s0 }
 0x132   :  { %380 = vrot.lane.b32.xlu1 %v2492_v56, %s2106_s0 }
 0x133   :  { %813 = vrot.lane.b32.xlu0 %v2508_v13, %s2106_s0 }
 0x136   :  { %815 = vrot.lane.b32.xlu1 %v2512_v15, %s2106_s0 }
 0x137   :  { %817 = vrot.lane.b32.xlu0 %v2510_v14, %s2106_s0 }
 0x13a   :  { %1249 = vrot.lane.b32.xlu1 %v1117_v33, %s2106_s0 }
 0x13b   :  { %1247 = vrot.lane.b32.xlu0 %v2524_v31, %s2106_s0 }
 0x13f   :  { %1251 = vrot.lane.b32.xlu0 %v2528_v39, %s2106_s0 }
 0x159   :  { %v397_v56 = vpop.permute.xlu0 %396 }
 0x15d   :  { %v399_v21 = vpop.permute.xlu0 %398 }
 0x15e   :  { %v402_v15 = vsel %vm384_vm5, %v397_v56, %v399_v21  ;;  %v436_v56 = vmul.f32 0.9, %v32_v10 }
 0x15f   :  { %v407_v23 = vmax.f32 %v2494_v60, %v402_v15 }
 0x160   :  { %v401_v24 = vpop.permute.xlu1 %400 }
 0x161   :  { %413 = vrot.lane.b32.xlu1 %v407_v23, %s2107_s2  ;;  %v403_v25 = vsel %vm384_vm5, %v399_v21, %v401_v24  ;;  %v409_v26 = vmax.f32 %v2496_v61, %v401_v24 }
 0x162   :  { %v408_v27 = vmax.f32 %v2500_v16, %v403_v25 }
 0x164   :  { %415 = vrot.lane.b32.xlu0 %v408_v27, %s2107_s2 }
 0x165   :  { %417 = vrot.lane.b32.xlu1 %v409_v26, %s2107_s2  ;;  %v434_v26 = vsel %vm432_vm7, 1.0, %v2104_v35 }
 0x168   :  { %1674 = vrot.lane.b32.xlu0 %v2542_v58, %s2106_s0 }
 0x169   :  { %1676 = vrot.lane.b32.xlu1 %v1544_v7, %s2106_s0 }
 0x170   :  { %v831_v60 = vpop.permute.xlu1 %830 }
 0x171   :  { %v833_v28 = vpop.permute.xlu0 %832 }
 0x172   :  { %v836_v61 = vsel %vm384_vm5, %v831_v60, %v833_v28 }
 0x173   :  { %v841_v36 = vmax.f32 %v2510_v14, %v836_v61 }
 0x174   :  { %v835_v29 = vpop.permute.xlu1 %834 }
 0x175   :  { %v837_v33 = vsel %vm384_vm5, %v833_v28, %v835_v29  ;;  %v843_v34 = vmax.f32 %v2516_v22, %v835_v29 }
 0x176   :  { %v842_v16 = vmax.f32 %v2514_v17, %v837_v33 }
 0x177   :  { %851 = vrot.lane.b32.xlu1 %v843_v34, %s2107_s2 }
 0x178   :  { %849 = vrot.lane.b32.xlu0 %v842_v16, %s2107_s2 }
 0x17b   :  { %847 = vrot.lane.b32.xlu1 %v841_v36, %s2107_s2 }
 0x181   :  { %v1265_v37 = vpop.permute.xlu0 %1264 }
 0x182   :  { %v1267_v38 = vpop.permute.xlu1 %1266 }
 0x183   :  { %v1270_v42 = vsel %vm384_vm5, %v1265_v37, %v1267_v38 }
 0x184   :  { %v1275_v43 = vmax.f32 %v2528_v39, %v1270_v42 }
 0x186   :  { %1281 = vrot.lane.b32.xlu1 %v1275_v43, %s2107_s2 }
 0x188   :  { %v1269_v22 = vpop.permute.xlu0 %1268 }
 0x189   :  { %v1271_v44 = vsel %vm384_vm5, %v1267_v38, %v1269_v22  ;;  %v1277_v17 = vmax.f32 %v2530_v40, %v1269_v22 }
 0x18a   :  { %v1276_v45 = vmax.f32 %v2532_v41, %v1271_v44 }
 0x18b   :  { %1285 = vrot.lane.b32.xlu1 %v1277_v17, %s2107_s2 }
 0x18c   :  { %1283 = vrot.lane.b32.xlu0 %v1276_v45, %s2107_s2 }
 0x190   :  { %1678 = vrot.lane.b32.xlu0 %v2544_v59, %s2106_s0 }
 0x198   :  { %v1692_v14 = vpop.permute.xlu1 %1691 }
 0x199   :  { %v1694_v46 = vpop.permute.xlu0 %1693 }
 0x19a   :  { %v1697_v39 = vsel %vm384_vm5, %v1692_v14, %v1694_v46 }
 0x19b   :  { %v1702_v47 = vmax.f32 %v2544_v59, %v1697_v39 }
 0x19c   :  { %v1696_v49 = vpop.permute.xlu1 %1695 }
 0x19d   :  { %v1698_v51 = vsel %vm384_vm5, %v1694_v46, %v1696_v49  ;;  %1708 = vrot.lane.b32.xlu1 %v1702_v47, %s2107_s2  ;;  %v1704_v41 = vmax.f32 %v2548_v4, %v1696_v49 }
 0x19e   :  { %v1703_v40 = vmax.f32 %v2546_v62, %v1698_v51 }
 0x1a0   :  { %1710 = vrot.lane.b32.xlu0 %v1703_v40, %s2107_s2  ;;  %v379_v57 = vpop.permute.xlu1 %378 }
 0x1a1   :  { %1712 = vrot.lane.b32.xlu1 %v1704_v41, %s2107_s2 }
 0x1a4   :  { %v381_v63 = vpop.permute.xlu1 %380 }
 0x1a5   :  { %v385_v4 = vsel %vm384_vm5, %v379_v57, %v381_v63 }
 0x1a6   :  { %v390_v12 = vmax.f32 %v2486_v54, %v385_v4 }
 0x1a8   :  { %v816_v0 = vpop.permute.xlu1 %815 }
 0x1aa   :  { %v2613_v52 = vpop.permute.xlu0 %28 }
 0x1ac   :  { %v2617_v2 = vpop.permute.xlu1 %1249 }
 0x1ae   :  { %v383_v53 = vpop.permute.xlu0 %382 }
 0x1af   :  { %v386_v9 = vsel %vm384_vm5, %v381_v63, %v383_v53  ;;  %v392_v11 = vmax.f32 %v2488_v55, %v383_v53 }
 0x1b0   :  { %v391_v18 = vmax.f32 %v2490_v3, %v386_v9 }
 0x1b2   :  { %v814_v7 = vpop.permute.xlu0 %813 }
 0x1b3   :  { %v819_v44 = vsel %vm384_vm5, %v814_v7, %v816_v0 }
 0x1b4   :  { %v824_v49 = vmax.f32 %v2503_v5, %v819_v44 }
 0x1b6   :  { %v818_v59 = vpop.permute.xlu0 %817 }
 0x1b7   :  { %v820_v42 = vsel %vm384_vm5, %v816_v0, %v818_v59  ;;  %v826_v43 = vmax.f32 %v2508_v13, %v818_v59 }
 0x1b8   :  { %v825_v14 = vmax.f32 %v2506_v8, %v820_v42 }
 0x1ba   :  { %v2615_v1 = vpop.permute.xlu0 %1247 }
 0x1be   :  { %v2619_v6 = vpop.permute.xlu0 %1251 }
 0x1d3   :  { %v414_v62 = vpop.permute.xlu1 %413 }
 0x1d6   :  { %v416_v20 = vpop.permute.xlu0 %415 }
 0x1d7   :  { %v418_v19 = vpop.permute.xlu1 %417  ;;  %v420_v15 = vsel %vm419_vm6, %v414_v62, %v416_v20 }
 0x1d8   :  { %v427_v21 = vmax.f32 %v392_v11, %v418_v19  ;;  %v421_v23 = vsel %vm419_vm6, %v416_v20, %v418_v19  ;;  %v425_v24 = vmax.f32 %v390_v12, %v420_v15  ;;  %v1253_v19 = vsel %vm384_vm5, %v2615_v1, %v2617_v2 }
 0x1d9   :  { %v426_v25 = vmax.f32 %v391_v18, %v421_v23  ;;  %v1254_v20 = vsel %vm384_vm5, %v2617_v2, %v2619_v6 }
 0x1da   :  { %v430_v27 = vadd.f32 %v427_v21, %v2613_v52  ;;  %v428_v55 = vadd.f32 %v425_v24, %v2613_v52  ;;  %v2650_v37 = vpop.permute.xlu0 %1674  ;;  %v1260_v21 = vmax.f32 %v2524_v31, %v2619_v6  ;;  %v1258_v24 = vmax.f32 %v2522_v30, %v1253_v19 }
 0x1db   :  { %v429_v54 = vadd.f32 %v426_v25, %v2613_v52  ;;  %v2648_v36 = vpop.permute.xlu1 %1676  ;;  %v1259_v25 = vmax.f32 %v2526_v32, %v1254_v20 }
 0x1dc   :  { %v442_v3 = vadd.f32 %v436_v56, %v430_v27 }
 0x1dd   :  { %v439_v60 = vcombine.low %v428_v55, %v429_v54  ;;  %v2101_v34 = vcombine.low %v429_v54, %v429_v54 }
 0x1de   :  { %v444_v28 = vsub.f32 %v442_v3, %v434_v26 }
 0x1df   :  { %471 = vst [vmem:[%s2754_s4] sm:$0xf] %v439_v60  ;;  %vm445_vm10 = vcmp.gt.f32.partialorder %v439_v60, 1.0  ;;  %472 = vst [vmem:[%s2754_s4 + $0x8] sm:$0xf] %v2101_v34  ;;  %v864_v59 = vmul.f32 0.9, %v439_v60 }
 0x1e0   :  { %474 = vst.msk [vmem:[%s2754_s4 + $0x10] sm:$0xf] %vm22_vm4, %v444_v28  ;;  %vm446_vm8 = vcmp.gt.f32.partialorder %v444_v28, 1.0  ;;  %v447_v61 = vsel %vm445_vm10, 1.0, %v2104_v35  ;;  %v865_v47 = vmul.f32 0.9, %v444_v28 }
 0x1e1   :  { %v448_v29 = vsel %vm446_vm8, 1.0, %v2104_v35  ;;  %v450_v16 = vcombine.high %v447_v61, %v447_v61 }
 0x1e2   :  { %v1939_v33 = vpack.c.bf16 %v448_v29, %v448_v29 }
 0x1e3   :  { %v1938_v38 = vpack.c.bf16 %v450_v16, %v447_v61 }
 0x1e4   :  { %467 = vst.msk [vmem:[%s2755_s3 + $0x8] sm:$0x3] %vm466_vm9, %v1939_v33 }
 0x1e5   :  { %465 = vst [vmem:[%s2755_s3] sm:$0x33] %v1938_v38 }
 0x1e9   :  { %v852_v22 = vpop.permute.xlu1 %851 }
 0x1ea   :  { %v860_v17 = vmax.f32 %v826_v43, %v852_v22  ;;  %v850_v45 = vpop.permute.xlu0 %849 }
 0x1eb   :  { %v854_v46 = vsel %vm419_vm6, %v850_v45, %v852_v22 }
 0x1ec   :  { %v863_v39 = vadd.f32 %v860_v17, %v2613_v52  ;;  %v859_v51 = vmax.f32 %v825_v14, %v854_v46 }
 0x1ed   :  { %v848_v13 = vpop.permute.xlu1 %847 }
 0x1ee   :  { %v871_v40 = vadd.f32 %v865_v47, %v863_v39  ;;  %v853_v41 = vsel %vm419_vm6, %v848_v13, %v850_v45  ;;  %v862_v7 = vadd.f32 %v859_v51, %v2613_v52  ;;  %v1680_v45 = vsel %vm384_vm5, %v2650_v37, %v2648_v36 }
 0x1ef   :  { %v858_v53 = vmax.f32 %v824_v49, %v853_v41  ;;  %v1685_v39 = vmax.f32 %v2537_v48, %v1680_v45 }
 0x1f0   :  { %v873_v57 = vsub.f32 %v871_v40, %v448_v29 }
 0x1f1   :  { %v861_v63 = vadd.f32 %v858_v53, %v2613_v52 }
 0x1f2   :  { %v902_v8 = vcombine.low %v873_v57, %v873_v57  ;;  %vm875_vm12 = vcmp.gt.f32.partialorder %v873_v57, 1.0  ;;  %v1299_v3 = vmul.f32 0.9, %v873_v57 }
 0x1f3   :  { %v868_v0 = vcombine.low %v861_v63, %v862_v7  ;;  %v877_v62 = vsel %vm875_vm12, 1.0, %v2104_v35 }
 0x1f4   :  { %908 = vst.msk [vmem:[%s2754_s4 + $0x10] sm:$0xf0] %vm907_vm11, %v902_v8  ;;  %v1941_v5 = vpack.c.bf16 %v877_v62, %v877_v62 }
 0x1f5   :  { %v870_v4 = vadd.f32 %v868_v0, %v864_v59 }
 0x1f6   :  { %v893_v9 = vrot.slane %v1941_v5, 6 }
 0x1f7   :  { %v872_v10 = vsub.f32 %v870_v4, %v447_v61 }
 0x1f8   :  { %898 = vst.msk [vmem:[%s2755_s3 + $0x8] sm:$0xc] %vm897_vm13, %v893_v9  ;;  %v1282_v12 = vpop.permute.xlu1 %1281 }
 0x1f9   :  { %v901_v11 = vcombine.low %v872_v10, %v872_v10  ;;  %906 = vst [vmem:[%s2754_s4 + $0x8] sm:$0xf0] %v872_v10  ;;  %vm874_vm14 = vcmp.gt.f32.partialorder %v872_v10, 1.0  ;;  %v1298_v29 = vmul.f32 0.9, %v872_v10 }
 0x1fa   :  { %v876_v18 = vsel %vm874_vm14, 1.0, %v2104_v35 }
 0x1fb   :  { %905 = vst [vmem:[%s2754_s4] sm:$0xf0] %v901_v11  ;;  %v879_v56 = vcombine.high %v876_v18, %v876_v18 }
 0x1fd   :  { %v1286_v15 = vpop.permute.xlu1 %1285  ;;  %v1940_v23 = vpack.c.bf16 %v879_v56, %v876_v18 }
 0x1fe   :  { %v1294_v26 = vmax.f32 %v1260_v21, %v1286_v15  ;;  %v1284_v1 = vpop.permute.xlu0 %1283 }
 0x1ff   :  { %v892_v27 = vrot.slane %v1940_v23, 6  ;;  %v1287_v55 = vsel %vm419_vm6, %v1282_v12, %v1284_v1  ;;  %v1288_v2 = vsel %vm419_vm6, %v1284_v1, %v1286_v15 }
 0x200   :  { %v1297_v54 = vadd.f32 %v1294_v26, %v2613_v52  ;;  %v1292_v60 = vmax.f32 %v1258_v24, %v1287_v55  ;;  %v1293_v28 = vmax.f32 %v1259_v25, %v1288_v2 }
 0x201   :  { %896 = vst [vmem:[%s2755_s3] sm:$0xcc] %v892_v27 }
 0x202   :  { %v1305_v31 = vadd.f32 %v1299_v3, %v1297_v54  ;;  %v1295_v30 = vadd.f32 %v1292_v60, %v2613_v52  ;;  %v1296_v32 = vadd.f32 %v1293_v28, %v2613_v52  ;;  %v1679_v44 = vpop.permute.xlu0 %1678 }
 0x203   :  { %v1681_v46 = vsel %vm384_vm5, %v2648_v36, %v1679_v44  ;;  %v1687_v47 = vmax.f32 %v2542_v58, %v1679_v44 }
 0x204   :  { %v1307_v6 = vsub.f32 %v1305_v31, %v877_v62  ;;  %v1302_v33 = vcombine.low %v1295_v30, %v1296_v32  ;;  %v1686_v51 = vmax.f32 %v2540_v50, %v1681_v46 }
 0x206   :  { %1335 = vst.msk [vmem:[%s2754_s4 + $0x28] sm:$0xf] %vm22_vm4, %v1307_v6  ;;  %v1304_v34 = vadd.f32 %v1302_v33, %v1298_v29  ;;  %vm1309_vm15 = vcmp.gt.f32.partialorder %v1307_v6, 1.0  ;;  %v1726_v63 = vmul.f32 0.9, %v1307_v6 }
 0x207   :  { %v1311_v61 = vsel %vm1309_vm15, 1.0, %v2104_v35 }
 0x208   :  { %v1306_v16 = vsub.f32 %v1304_v34, %v876_v18  ;;  %v1943_v38 = vpack.c.bf16 %v1311_v61, %v1311_v61 }
 0x20a   :  { %v1331_v42 = vcombine.high %v1306_v16, %v1306_v16  ;;  %1333 = vst [vmem:[%s2754_s4 + $0x18] sm:$0xf] %v1306_v16  ;;  %vm1308_vm0 = vcmp.gt.f32.partialorder %v1306_v16, 1.0  ;;  %1329 = vst.msk [vmem:[%s2755_s3 + $0x14] sm:$0x3] %vm466_vm9, %v1943_v38 }
 0x20b   :  { %v1310_v43 = vsel %vm1308_vm0, 1.0, %v2104_v35  ;;  %v1725_v58 = vmul.f32 0.9, %v1306_v16 }
 0x20c   :  { %1334 = vst [vmem:[%s2754_s4 + $0x20] sm:$0xf] %v1331_v42  ;;  %v1313_v22 = vcombine.high %v1310_v43, %v1310_v43 }
 0x20e   :  { %v1942_v17 = vpack.c.bf16 %v1313_v22, %v1310_v43 }
 0x20f   :  { %v1709_v14 = vpop.permute.xlu1 %1708 }
 0x210   :  { %1328 = vst [vmem:[%s2755_s3 + $0xc] sm:$0x33] %v1942_v17 }
 0x212   :  { %v1711_v49 = vpop.permute.xlu0 %1710 }
 0x213   :  { %v1714_v13 = vsel %vm419_vm6, %v1709_v14, %v1711_v49  ;;  %v1713_v40 = vpop.permute.xlu1 %1712 }
 0x214   :  { %v1719_v41 = vmax.f32 %v1685_v39, %v1714_v13  ;;  %v1715_v37 = vsel %vm419_vm6, %v1711_v49, %v1713_v40  ;;  %v1721_v53 = vmax.f32 %v1687_v47, %v1713_v40 }
 0x215   :  { %v1720_v57 = vmax.f32 %v1686_v51, %v1715_v37 }
 0x216   :  { %v1722_v36 = vadd.f32 %v1719_v41, %v2613_v52  ;;  %v1724_v7 = vadd.f32 %v1721_v53, %v2613_v52 }
 0x217   :  { %v1723_v48 = vadd.f32 %v1720_v57, %v2613_v52 }
 0x218   :  { %v1732_v8 = vadd.f32 %v1726_v63, %v1724_v7 }
 0x219   :  { %v1729_v59 = vcombine.low %v1722_v36, %v1723_v48 }
 0x21a   :  { %v1734_v0 = vsub.f32 %v1732_v8, %v1311_v61 }
 0x21b   :  { %v1731_v50 = vadd.f32 %v1729_v59, %v1725_v58 }
 0x21c   :  { %vm1736_vm1 = vcmp.gt.f32.partialorder %v1734_v0, 1.0  ;;  %v1762_v62 = vcombine.low %v1734_v0, %v1734_v0  ;;  %1769 = vst.msk [vmem:[#allocation2 + $0x8] sm:$0xf] %vm22_vm4, %v1734_v0 }
 0x21d   :  { %v1733_v5 = vsub.f32 %v1731_v50, %v1310_v43  ;;  %v1738_v4 = vsel %vm1736_vm1, 1.0, %v2104_v35 }
 0x21e   :  { %v1945_v9 = vpack.c.bf16 %v1738_v4, %v1738_v4  ;;  %1767 = vst.msk [vmem:[%s2754_s4 + $0x28] sm:$0xf0] %vm907_vm11, %v1762_v62 }
 0x21f   :  { %vm1735_vm2 = vcmp.gt.f32.partialorder %v1733_v5, 1.0  ;;  %v1761_v52 = vcombine.low %v1733_v5, %v1733_v5  ;;  %1766 = vst [vmem:[%s2754_s4 + $0x20] sm:$0xf0] %v1733_v5 }
 0x220   :  { %v1737_v10 = vsel %vm1735_vm2, 1.0, %v2104_v35  ;;  %v1754_v11 = vrot.slane %v1945_v9, 6 }
 0x221   :  { %v1740_v12 = vcombine.high %v1737_v10, %v1737_v10  ;;  %1765 = vst [vmem:[%s2754_s4 + $0x18] sm:$0xf0] %v1761_v52 }
 0x222   :  { %1758 = vst.msk [vmem:[%s2755_s3 + $0x14] sm:$0xc] %vm897_vm13, %v1754_v11 }
 0x223   :  { %v1944_v18 = vpack.c.bf16 %v1740_v12, %v1737_v10 }
 0x225   :  { %v1753_v19 = vrot.slane %v1944_v18, 6 }
 0x227   :  { %1757 = vst [vmem:[%s2755_s3 + $0xc] sm:$0xcc] %v1753_v19 }

// kernel: net_betas_forward.4
= control target key start
LH: loop header
LB: loop body
LE: loop exit
PB: predicated region body
PF: predicated region fallthrough
CT: control target
= control target key end

     0   :  { %v549_v0 = vmov 0.0   ;;  %vm550_vm0 = vmmov 0   ;;  %vm87_vm1 = vcmask 1041408   ;;  %vm83_vm2 = vcmask 818176   ;;  %s552_s6 = smov 96   ;;  %s553_s8 = smov 64   ;;  %s712_s0 = inlined_call_operand.vmem [shape: bf16[3,100,128], index: 0, kind: input, shape index: {}]   ;;  %s713_s1 = inlined_call_operand.vmem [shape: bf16[8,100], index: 1, kind: input, shape index: {}]   ;;  %s714_s2 = inlined_call_operand.vmem [shape: f32[8,1], index: 2, kind: input, shape index: {}]   ;;  %s715_s4 = inlined_call_operand.vmem [shape: f32[24,32], index: 4, kind: output, shape index: {1}]   ;;  %s716_s3 = inlined_call_operand.vmem [shape: bf16[24,32], index: 3, kind: output, shape index: {0}]  }
   0x1   :  { %467 = vmatprep.subr.bf16.mxu0 %v549_v0  ;;  %v528_v1 = vld [vmem:[%s712_s0] sm:$0xff]   ;;  %485 = vmatprep.subr.bf16.mxu1 %v549_v0  ;;  %v529_v2 = vld [vmem:[%s712_s0 + $0x8] sm:$0xff]   ;;  %v530_v3 = vld [vmem:[%s712_s0 + $0x34] sm:$0xff]   ;;  %v551_v26 = vmov 0   ;;  %vm21_vm3 = vcmask 261120   ;;  %vm150_vm6 = vcmask 257024  }
   0x2   :  { %481 = vmatprep.mubr.msk.bf16.mxu0 %vm550_vm0, %v549_v0  ;;  %499 = vmatprep.mubr.msk.bf16.mxu1 %vm550_vm0, %v549_v0  ;;  %v532_v4 = vld [vmem:[%s712_s0 + $0x3c] sm:$0xff]   ;;  %v531_v5 = vld [vmem:[%s712_s0 + $0x10] sm:$0xff]   ;;  %v534_v6 = vld [vmem:[%s712_s0 + $0x44] sm:$0xff]   ;;  %22 = vst.msk [vmem:[#allocation2] sm:$0xff] %vm21_vm3, %v549_v0 }
   0x3   :  { %468 = vmatpush3.bf16.msra.mxu0 %v528_v1  ;;  %486 = vmatpush3.bf16.msra.mxu1 %v530_v3  ;;  %v533_v7 = vld [vmem:[%s712_s0 + $0x18] sm:$0xff]   ;;  %v536_v8 = vld [vmem:[%s712_s0 + $0x4c] sm:$0xff]   ;;  %v535_v9 = vld [vmem:[%s712_s0 + $0x20] sm:$0xff]  }
   0x4   :  { %469 = vmatprep.subr.bf16.mxu0 %v549_v0  ;;  %487 = vmatprep.subr.bf16.mxu1 %v549_v0  ;;  %v538_v10 = vld [vmem:[%s712_s0 + $0x54] sm:$0xff]   ;;  %v539_v11 = vld [vmem:[%s712_s0 + $0x30] ss:$0 sps:$4 sm:$0x33]   ;;  %v537_v12 = vld [vmem:[%s712_s0 + $0x28] sm:$0xff]  }
   0x5   :  { %v540_v13 = vld [vmem:[%s712_s0 + $0x5c] sm:$0xff]   ;;  %v541_v14 = vld [vmem:[%s712_s0 + $0x64] ss:$0 sps:$4 sm:$0x33]   ;;  %v89_v15 = vsel %vm87_vm1, %v539_v11, 0  ;;  %v542_v18 = vld [vmem:[%s712_s0 + $0x68] sm:$0xff]   ;;  %526 = vset.pattern.permute.xlu1 %v551_v26  ;;  %527 = vset.pattern.permute.xlu0 %v551_v26 }
   0x6   :  { %v208_v16 = vsel %vm87_vm1, %v541_v14, 0  ;;  %v23_v17 = vld [vmem:[%s713_s1] sm:$0xf]  ;;  %v543_v19 = vld [vmem:[%s712_s0 + $0x70] sm:$0xff]   ;;  %v544_v20 = vld [vmem:[%s712_s0 + $0x78] sm:$0xff]  }
   0x7   :  { %470 = vmatpush3.bf16.msra.mxu0 %v529_v2  ;;  %488 = vmatpush3.bf16.msra.mxu1 %v532_v4  ;;  %v545_v21 = vld [vmem:[%s712_s0 + $0x80] sm:$0xff]   ;;  %v546_v22 = vld [vmem:[%s712_s0 + $0x88] sm:$0xff]   ;;  %v547_v23 = vld [vmem:[%s712_s0 + $0x90] sm:$0xff]  }
   0x8   :  { %471 = vmatprep.subr.bf16.mxu0 %v549_v0  ;;  %489 = vmatprep.subr.bf16.mxu1 %v549_v0  ;;  %v548_v24 = vld [vmem:[%s712_s0 + $0x98] ss:$0 sps:$4 sm:$0x33]   ;;  %v24_v38 = vld [vmem:[%s714_s2] sm:$0xff] }
   0x9   :  { %v323_v25 = vsel %vm87_vm1, %v548_v24, 0  ;;  %v30_v46 = vld [vmem:[#allocation2] sm:$0xff] }
   0xa   :  { %vm142_vm4 = vcmp.gt.f32.partialorder %v30_v46, 1.0  ;;  %v144_v50 = vmul.f32 0.9, %v30_v46 }
   0xb   :  { %472 = vmatpush3.bf16.msra.mxu0 %v531_v5  ;;  %490 = vmatpush3.bf16.msra.mxu1 %v534_v6  ;;  %v143_v52 = vsel %vm142_vm4, 1.0, %v549_v0 }
   0xc   :  { %473 = vmatprep.subr.bf16.mxu0 %v549_v0  ;;  %491 = vmatprep.subr.bf16.mxu1 %v549_v0 }
   0xf   :  { %474 = vmatpush3.bf16.msra.mxu0 %v533_v7  ;;  %492 = vmatpush3.bf16.msra.mxu1 %v536_v8 }
  0x10   :  { %475 = vmatprep.subr.bf16.mxu0 %v549_v0  ;;  %493 = vmatprep.subr.bf16.mxu1 %v549_v0 }
  0x13   :  { %476 = vmatpush3.bf16.msra.mxu0 %v535_v9  ;;  %494 = vmatpush3.bf16.msra.mxu1 %v538_v10 }
  0x14   :  { %477 = vmatprep.subr.bf16.mxu0 %v549_v0  ;;  %495 = vmatprep.subr.bf16.mxu1 %v549_v0 }
  0x17   :  { %478 = vmatpush3.bf16.msra.mxu0 %v537_v12  ;;  %496 = vmatpush3.bf16.msra.mxu1 %v540_v13 }
  0x18   :  { %479 = vmatprep.subr.bf16.mxu0 %v549_v0  ;;  %497 = vmatprep.subr.bf16.mxu1 %v549_v0 }
  0x1b   :  { %480 = vmatpush3.bf16.msra.mxu0 %v89_v15  ;;  %498 = vmatpush3.bf16.msra.mxu1 %v208_v16 }
  0x1c   :  { %503 = vmatprep.subr.bf16.mxu0 %v549_v0 }
  0x1e   :  { %482 = vmatmul.mubr.msk.bf16.vlgmr.msra.gmra.mrb[0].mxu0 %vm83_vm2, %v23_v17  ;;  %500 = vmatmul.mubr.msk.bf16.vlgmr.msra.gmra.mrb[0].mxu1 %vm83_vm2, %v23_v17 }
  0x1f   :  { %504 = vmatpush3.bf16.msra.mxu0 %v542_v18  ;;  %517 = vmatprep.mubr.msk.bf16.mxu0 %vm550_vm0, %v549_v0 }
  0x20   :  { %505 = vmatprep.subr.bf16.mxu0 %v549_v0 }
  0x23   :  { %506 = vmatpush3.bf16.msra.mxu0 %v543_v19 }
  0x24   :  { %507 = vmatprep.subr.bf16.mxu0 %v549_v0 }
  0x27   :  { %508 = vmatpush3.bf16.msra.mxu0 %v544_v20 }
  0x28   :  { %509 = vmatprep.subr.bf16.mxu0 %v549_v0 }
  0x2b   :  { %510 = vmatpush3.bf16.msra.mxu0 %v545_v21 }
  0x2c   :  { %511 = vmatprep.subr.bf16.mxu0 %v549_v0 }
  0x2f   :  { %512 = vmatpush3.bf16.msra.mxu0 %v546_v22 }
  0x30   :  { %513 = vmatprep.subr.bf16.mxu0 %v549_v0 }
  0x33   :  { %514 = vmatpush3.bf16.msra.mxu0 %v547_v23 }
  0x34   :  { %515 = vmatprep.subr.bf16.mxu0 %v549_v0 }
  0x37   :  { %516 = vmatpush3.bf16.msra.mxu0 %v323_v25 }
  0x3a   :  { %518 = vmatmul.mubr.msk.bf16.vlgmr.msra.gmra.mrb[4].mxu0 %vm83_vm2, %v23_v17 }
  0xf1   :  { %v125_v27 = vpop.f32.mrb[0].mxu0  ;;  %v244_v30 = vpop.f32.mrb[0].mxu1 }
  0xf2   :  { %132 = vrot.lane.b32.xlu0 %v125_v27, %s552_s6  ;;  %v483_v28 = vpop.f32.mrb[1].mxu0  ;;  %v501_v32 = vpop.f32.mrb[1].mxu1 }
  0xf3   :  { %v128_v29 = vpop.f32.mrb[2].mxu0  ;;  %v247_v33 = vpop.f32.mrb[2].mxu1 }
  0xf4   :  { %v484_v31 = vpop.f32.mrb[3].mxu0  ;;  %v502_v34 = vpop.f32.mrb[3].mxu1 }
  0xf6   :  { %251 = vrot.lane.b32.xlu0 %v244_v30, %s552_s6 }
 0x10d   :  { %v359_v35 = vpop.f32.mrb[4].mxu0 }
 0x10e   :  { %366 = vrot.lane.b32.xlu1 %v359_v35, %s552_s6  ;;  %v519_v36 = vpop.f32.mrb[5].mxu0 }
 0x10f   :  { %v362_v37 = vpop.f32.mrb[6].mxu0 }
 0x110   :  { %v520_v39 = vpop.f32.mrb[7].mxu0 }
 0x112   :  { %27 = vperm.xlu1 %526, %v24_v38  }
 0x164   :  { %v133_v40 = vpop.permute.xlu0 %132 }
 0x165   :  { %v135_v41 = vmax.f32 %v125_v27, %v133_v40 }
 0x167   :  { %137 = vrot.lane.b32.xlu0 %v135_v41, %s553_s8 }
 0x168   :  { %v252_v42 = vpop.permute.xlu0 %251 }
 0x169   :  { %v254_v43 = vmax.f32 %v244_v30, %v252_v42 }
 0x16b   :  { %256 = vrot.lane.b32.xlu1 %v254_v43, %s553_s8 }
 0x180   :  { %v367_v44 = vpop.permute.xlu1 %366 }
 0x181   :  { %v369_v45 = vmax.f32 %v359_v35, %v367_v44 }
 0x183   :  { %371 = vrot.lane.b32.xlu0 %v369_v45, %s553_s8 }
 0x191   :  { %v28_v47 = vpop.permute.xlu1 %27 }
 0x1d9   :  { %v138_v48 = vpop.permute.xlu0 %137 }
 0x1da   :  { %v140_v49 = vmax.f32 %v135_v41, %v138_v48 }
 0x1dc   :  { %v141_v51 = vadd.f32 %v140_v49, %v28_v47 }
 0x1dd   :  { %v257_v53 = vpop.permute.xlu1 %256 }
 0x1de   :  { %v145_v54 = vadd.f32 %v144_v50, %v141_v51  ;;  %v259_v55 = vmax.f32 %v254_v43, %v257_v53 }
 0x1e0   :  { %v146_v56 = vsub.f32 %v145_v54, %v143_v52  ;;  %v260_v58 = vadd.f32 %v259_v55, %v28_v47 }
 0x1e2   :  { %153 = vst.msk [vmem:[%s715_s4] sm:$0xff] %vm21_vm3, %v146_v56  ;;  %vm147_vm5 = vcmp.gt.f32.partialorder %v146_v56, 1.0  ;;  %v261_v57 = vmul.f32 0.9, %v146_v56 }
 0x1e3   :  { %v148_v59 = vsel %vm147_vm5, 1.0, %v549_v0 }
 0x1e4   :  { %v149_v60 = vpack.c.bf16 %v148_v59, %v148_v59  ;;  %v262_v61 = vadd.f32 %v261_v57, %v260_v58 }
 0x1e6   :  { %151 = vst.msk [vmem:[%s716_s3] sm:$0xf] %vm150_vm6, %v149_v60  ;;  %v263_v62 = vsub.f32 %v262_v61, %v148_v59 }
 0x1e8   :  { %268 = vst.msk [vmem:[%s715_s4 + $0x8] sm:$0xff] %vm21_vm3, %v263_v62  ;;  %vm264_vm7 = vcmp.gt.f32.partialorder %v263_v62, 1.0  ;;  %v376_v5 = vmul.f32 0.9, %v263_v62 }
 0x1e9   :  { %v265_v63 = vsel %vm264_vm7, 1.0, %v549_v0 }
 0x1ea   :  { %v266_v1 = vpack.c.bf16 %v265_v63, %v265_v63 }
 0x1ec   :  { %267 = vst.msk [vmem:[%s716_s3 + $0x4] sm:$0xf] %vm150_vm6, %v266_v1 }
 0x1f5   :  { %v372_v2 = vpop.permute.xlu0 %371 }
 0x1f6   :  { %v374_v3 = vmax.f32 %v369_v45, %v372_v2 }
 0x1f8   :  { %v375_v4 = vadd.f32 %v374_v3, %v28_v47 }
 0x1fa   :  { %v377_v6 = vadd.f32 %v376_v5, %v375_v4 }
 0x1fc   :  { %v378_v7 = vsub.f32 %v377_v6, %v265_v63 }
 0x1fe   :  { %vm379_vm8 = vcmp.gt.f32.partialorder %v378_v7, 1.0  ;;  %383 = vst.msk [vmem:[%s715_s4 + $0x10] sm:$0xff] %vm21_vm3, %v378_v7  ;;  %384 = vst.msk [vmem:[#allocation2] sm:$0xff] %vm21_vm3, %v378_v7 }
 0x1ff   :  { %v380_v8 = vsel %vm379_vm8, 1.0, %v549_v0 }
 0x200   :  { %v381_v9 = vpack.c.bf16 %v380_v8, %v380_v8 }
 0x202   :  { %382 = vst.msk [vmem:[%s716_s3 + $0x8] sm:$0xf] %vm150_vm6, %v381_v9 }

// kernel: net_betas_forward.5
= control target key start
LH: loop header
LB: loop body
LE: loop exit
PB: predicated region body
PF: predicated region fallthrough
CT: control target
= control target key end

     0   :  { %v851_v0 = vmov 0.0   ;;  %vm852_vm0 = vmmov 0   ;;  %v853_v4 = vmov 0   ;;  %vm21_vm1 = vcmask 15360   ;;  %s1112_s0 = inlined_call_operand.vmem [shape: bf16[4,128,2], index: 0, kind: input, shape index: {}]   ;;  %s1113_s1 = inlined_call_operand.vmem [shape: bf16[10,128], index: 1, kind: input, shape index: {}]   ;;  %s1114_s2 = inlined_call_operand.vmem [shape: f32[10,1], index: 2, kind: input, shape index: {}]   ;;  %s1115_s4 = inlined_call_operand.vmem [shape: f32[40,2], index: 4, kind: output, shape index: {1}]   ;;  %s1116_s3 = inlined_call_operand.vmem [shape: bf16[40,2], index: 3, kind: output, shape index: {0}]  }
   0x1   :  { %734 = vmatprep.subr.bf16.mxu0 %v851_v0  ;;  %754 = vmatprep.subr.bf16.mxu1 %v851_v0  ;;  %v818_v1 = vld [vmem:[%s1112_s0] sm:$0xff]   ;;  %v820_v3 = vld [vmem:[%s1112_s0 + $0x8] sm:$0xff]   ;;  %v822_v6 = vld [vmem:[%s1112_s0 + $0x10] sm:$0xff]   ;;  %22 = vst.msk [vmem:[#allocation2] sm:$0xff] %vm21_vm1, %v851_v0  ;;  %vm23_vm2 = vcmask 9216   ;;  %vm174_vm6 = vcmask 11264  }
   0x2   :  { %v819_v2 = vld [vmem:[%s1112_s0 + $0x40] sm:$0xff]   ;;  %750 = vmatprep.mubr.msk.bf16.mxu0 %vm852_vm0, %v851_v0  ;;  %770 = vmatprep.mubr.msk.bf16.mxu1 %vm852_vm0, %v851_v0  ;;  %v821_v5 = vld [vmem:[%s1112_s0 + $0x48] sm:$0xff]   ;;  %v823_v7 = vld [vmem:[%s1112_s0 + $0x50] sm:$0xff]   ;;  %24 = vst.msk [vmem:[#allocation2 + $0x8] sm:$0x3] %vm23_vm2, %v851_v0  ;;  %vm176_vm8 = vcmask 8192  }
   0x3   :  { %735 = vmatpush3.bf16.msra.mxu0 %v818_v1  ;;  %817 = vset.pattern.permute.xlu0 %v853_v4  ;;  %v824_v8 = vld [vmem:[%s1112_s0 + $0x18] sm:$0xff]   ;;  %v826_v10 = vld [vmem:[%s1112_s0 + $0x20] sm:$0xff]   ;;  %v828_v12 = vld [vmem:[%s1112_s0 + $0x28] sm:$0xff]   ;;  %vm304_vm11 = vcmask 1040384   ;;  %vm305_vm12 = vcmask 1044484   ;;  %vm313_vm13 = vcmask 11265  }
   0x4   :  { %755 = vmatpush3.bf16.msra.mxu1 %v819_v2  ;;  %736 = vmatprep.subr.bf16.mxu0 %v851_v0  ;;  %v825_v9 = vld [vmem:[%s1112_s0 + $0x58] sm:$0xff]   ;;  %v827_v11 = vld [vmem:[%s1112_s0 + $0x60] sm:$0xff]   ;;  %v829_v13 = vld [vmem:[%s1112_s0 + $0x68] sm:$0xff]  }
   0x5   :  { %756 = vmatprep.subr.bf16.mxu1 %v851_v0  ;;  %v830_v14 = vld [vmem:[%s1112_s0 + $0x30] sm:$0xff]   ;;  %v832_v16 = vld [vmem:[%s1112_s0 + $0x38] sm:$0xff]   ;;  %v834_v18 = vld [vmem:[%s1113_s1] sm:$0x1f]  }
   0x6   :  { %v831_v15 = vld [vmem:[%s1112_s0 + $0x70] sm:$0xff]   ;;  %v833_v17 = vld [vmem:[%s1112_s0 + $0x78] sm:$0xff]   ;;  %v835_v19 = vld [vmem:[%s1112_s0 + $0x80] sm:$0xff]  }
   0x7   :  { %737 = vmatpush3.bf16.msra.mxu0 %v820_v3  ;;  %v836_v20 = vld [vmem:[%s1112_s0 + $0xc0] sm:$0xff]   ;;  %v837_v21 = vld [vmem:[%s1112_s0 + $0x88] sm:$0xff]   ;;  %v839_v24 = vld [vmem:[%s1112_s0 + $0x90] sm:$0xff]  }
   0x8   :  { %757 = vmatpush3.bf16.msra.mxu1 %v821_v5  ;;  %738 = vmatprep.subr.bf16.mxu0 %v851_v0  ;;  %v27_v22 = vld [vmem:[%s1114_s2] sm:$0xff]  ;;  %v838_v23 = vld [vmem:[%s1112_s0 + $0xc8] sm:$0xff]   ;;  %v840_v26 = vld [vmem:[%s1112_s0 + $0xd0] sm:$0xff]  }
   0x9   :  { %758 = vmatprep.subr.bf16.mxu1 %v851_v0  ;;  %31 = vperm.xlu0 %817, %v27_v22   ;;  %v28_v25 = vld [vmem:[%s1114_s2 + $0x8] sm:$0x3]  ;;  %v841_v27 = vld [vmem:[%s1112_s0 + $0x98] sm:$0xff]   ;;  %v843_v29 = vld [vmem:[%s1112_s0 + $0xa0] sm:$0xff]  }
   0xa   :  { %v842_v28 = vld [vmem:[%s1112_s0 + $0xd8] sm:$0xff]   ;;  %v844_v30 = vld [vmem:[%s1112_s0 + $0xe0] sm:$0xff]   ;;  %v845_v31 = vld [vmem:[%s1112_s0 + $0xa8] sm:$0xff]  }
   0xb   :  { %739 = vmatpush3.bf16.msra.mxu0 %v822_v6  ;;  %v846_v32 = vld [vmem:[%s1112_s0 + $0xe8] sm:$0xff]   ;;  %v847_v33 = vld [vmem:[%s1112_s0 + $0xb0] sm:$0xff]   ;;  %v849_v35 = vld [vmem:[%s1112_s0 + $0xb8] sm:$0xff]  }
   0xc   :  { %759 = vmatpush3.bf16.msra.mxu1 %v823_v7  ;;  %740 = vmatprep.subr.bf16.mxu0 %v851_v0  ;;  %v848_v34 = vld [vmem:[%s1112_s0 + $0xf0] sm:$0xff]   ;;  %v850_v36 = vld [vmem:[%s1112_s0 + $0xf8] sm:$0xff]   ;;  %v39_v38 = vld [vmem:[#allocation2] sm:$0xff] }
   0xd   :  { %760 = vmatprep.subr.bf16.mxu1 %v851_v0  ;;  %36 = vperm.xlu0 %817, %v28_v25   ;;  %v40_v39 = vld [vmem:[#allocation2 + $0x8] sm:$0x3]  ;;  %vm152_vm3 = vcmp.gt.f32.partialorder %v39_v38, 1.0  ;;  %v156_v40 = vmul.f32 0.9, %v39_v38  ;;  %vm306_vm14 = vmor %vm304_vm11, %vm305_vm12  ;;  %vm578_vm12 = vcmask 1046532  }
   0xe   :  { %vm153_vm4 = vcmp.gt.f32.partialorder %v40_v39, 1.0  ;;  %v157_v45 = vmul.f32 0.9, %v40_v39  ;;  %v154_v47 = vsel %vm152_vm3, 1.0, %v851_v0  ;;  %vm441_vm3 = vcmask 1045508  }
   0xf   :  { %741 = vmatpush3.bf16.msra.mxu0 %v824_v8  ;;  %v155_v54 = vsel %vm153_vm4, 1.0, %v851_v0 }
  0x10   :  { %761 = vmatpush3.bf16.msra.mxu1 %v825_v9  ;;  %742 = vmatprep.subr.bf16.mxu0 %v851_v0 }
  0x11   :  { %762 = vmatprep.subr.bf16.mxu1 %v851_v0 }
  0x13   :  { %743 = vmatpush3.bf16.msra.mxu0 %v826_v10 }
  0x14   :  { %763 = vmatpush3.bf16.msra.mxu1 %v827_v11  ;;  %744 = vmatprep.subr.bf16.mxu0 %v851_v0 }
  0x15   :  { %764 = vmatprep.subr.bf16.mxu1 %v851_v0 }
  0x17   :  { %745 = vmatpush3.bf16.msra.mxu0 %v828_v12 }
  0x18   :  { %765 = vmatpush3.bf16.msra.mxu1 %v829_v13  ;;  %746 = vmatprep.subr.bf16.mxu0 %v851_v0 }
  0x19   :  { %766 = vmatprep.subr.bf16.mxu1 %v851_v0 }
  0x1b   :  { %747 = vmatpush3.bf16.msra.mxu0 %v830_v14 }
  0x1c   :  { %767 = vmatpush3.bf16.msra.mxu1 %v831_v15  ;;  %748 = vmatprep.subr.bf16.mxu0 %v851_v0 }
  0x1d   :  { %768 = vmatprep.subr.bf16.mxu1 %v851_v0 }
  0x1f   :  { %749 = vmatpush3.bf16.msra.mxu0 %v832_v16 }
  0x20   :  { %769 = vmatpush3.bf16.msra.mxu1 %v833_v17  ;;  %774 = vmatprep.subr.bf16.mxu0 %v851_v0 }
  0x21   :  { %794 = vmatprep.subr.bf16.mxu1 %v851_v0 }
  0x22   :  { %751 = vmatmul.mubr.bf16.vlgmr.msra.gmra.mrb[0].mxu0 %v834_v18 }
  0x23   :  { %771 = vmatmul.mubr.bf16.vlgmr.msra.gmra.mrb[0].mxu1 %v834_v18  ;;  %775 = vmatpush3.bf16.msra.mxu0 %v835_v19 }
  0x24   :  { %795 = vmatpush3.bf16.msra.mxu1 %v836_v20  ;;  %776 = vmatprep.subr.bf16.mxu0 %v851_v0 }
  0x25   :  { %796 = vmatprep.subr.bf16.mxu1 %v851_v0  ;;  %790 = vmatprep.mubr.msk.bf16.mxu0 %vm852_vm0, %v851_v0 }
  0x26   :  { %810 = vmatprep.mubr.msk.bf16.mxu1 %vm852_vm0, %v851_v0  ;;  %vm440_vm0 = vcmask 1041408  }
  0x27   :  { %777 = vmatpush3.bf16.msra.mxu0 %v837_v21 }
  0x28   :  { %797 = vmatpush3.bf16.msra.mxu1 %v838_v23  ;;  %778 = vmatprep.subr.bf16.mxu0 %v851_v0 }
  0x29   :  { %798 = vmatprep.subr.bf16.mxu1 %v851_v0 }
  0x2b   :  { %779 = vmatpush3.bf16.msra.mxu0 %v839_v24 }
  0x2c   :  { %799 = vmatpush3.bf16.msra.mxu1 %v840_v26  ;;  %780 = vmatprep.subr.bf16.mxu0 %v851_v0 }
  0x2d   :  { %800 = vmatprep.subr.bf16.mxu1 %v851_v0 }
  0x2f   :  { %781 = vmatpush3.bf16.msra.mxu0 %v841_v27 }
  0x30   :  { %801 = vmatpush3.bf16.msra.mxu1 %v842_v28  ;;  %782 = vmatprep.subr.bf16.mxu0 %v851_v0 }
  0x31   :  { %802 = vmatprep.subr.bf16.mxu1 %v851_v0 }
  0x33   :  { %783 = vmatpush3.bf16.msra.mxu0 %v843_v29 }
  0x34   :  { %803 = vmatpush3.bf16.msra.mxu1 %v844_v30  ;;  %784 = vmatprep.subr.bf16.mxu0 %v851_v0 }
  0x35   :  { %804 = vmatprep.subr.bf16.mxu1 %v851_v0 }
  0x37   :  { %785 = vmatpush3.bf16.msra.mxu0 %v845_v31 }
  0x38   :  { %805 = vmatpush3.bf16.msra.mxu1 %v846_v32  ;;  %786 = vmatprep.subr.bf16.mxu0 %v851_v0 }
  0x39   :  { %806 = vmatprep.subr.bf16.mxu1 %v851_v0 }
  0x3b   :  { %787 = vmatpush3.bf16.msra.mxu0 %v847_v33 }
  0x3c   :  { %807 = vmatpush3.bf16.msra.mxu1 %v848_v34  ;;  %788 = vmatprep.subr.bf16.mxu0 %v851_v0 }
  0x3d   :  { %808 = vmatprep.subr.bf16.mxu1 %v851_v0 }
  0x3f   :  { %789 = vmatpush3.bf16.msra.mxu0 %v849_v35 }
  0x40   :  { %809 = vmatpush3.bf16.msra.mxu1 %v850_v36 }
  0x42   :  { %791 = vmatmul.mubr.bf16.vlgmr.msra.gmra.mrb[4].mxu0 %v834_v18 }
  0x43   :  { %811 = vmatmul.mubr.bf16.vlgmr.msra.gmra.mrb[4].mxu1 %v834_v18 }
  0x88   :  { %v1028_v37 = vpop.permute.xlu0 %31 }
  0x8c   :  { %v1030_v42 = vpop.permute.xlu0 %36 }
  0xf5   :  { %v145_v41 = vpop.f32.mrb[0].mxu0 }
  0xf6   :  { %v146_v43 = vadd.f32 %v145_v41, %v1028_v37  ;;  %v752_v44 = vpop.f32.mrb[1].mxu0  ;;  %v281_v46 = vpop.f32.mrb[0].mxu1 }
  0xf7   :  { %v148_v48 = vpop.f32.mrb[2].mxu0  ;;  %v772_v49 = vpop.f32.mrb[1].mxu1  ;;  %v282_v58 = vadd.f32 %v281_v46, %v1028_v37 }
  0xf8   :  { %v158_v50 = vadd.f32 %v156_v40, %v146_v43  ;;  %v149_v51 = vadd.f32 %v148_v48, %v1030_v42  ;;  %v753_v52 = vpop.f32.mrb[3].mxu0  ;;  %v284_v53 = vpop.f32.mrb[2].mxu1 }
  0xf9   :  { %v773_v55 = vpop.f32.mrb[3].mxu1  ;;  %v285_v61 = vadd.f32 %v284_v53, %v1030_v42 }
  0xfa   :  { %v160_v56 = vsub.f32 %v158_v50, %v154_v47  ;;  %v159_v57 = vadd.f32 %v157_v45, %v149_v51 }
  0xfc   :  { %179 = vst.msk [vmem:[%s1115_s4] sm:$0xff] %vm21_vm1, %v160_v56  ;;  %v161_v59 = vsub.f32 %v159_v57, %v155_v54  ;;  %vm162_vm5 = vcmp.gt.f32.partialorder %v160_v56, 1.0  ;;  %v288_v60 = vmul.f32 0.9, %v160_v56 }
  0xfd   :  { %v164_v62 = vsel %vm162_vm5, 1.0, %v851_v0  ;;  %vm449_vm5 = vcmask 11266  }
  0xfe   :  { %181 = vst.msk [vmem:[%s1115_s4 + $0x8] sm:$0x3] %vm23_vm2, %v161_v59  ;;  %v690_v63 = vpack.c.bf16 %v164_v62, %v164_v62  ;;  %v290_v1 = vadd.f32 %v288_v60, %v282_v58  ;;  %vm163_vm7 = vcmp.gt.f32.partialorder %v161_v59, 1.0  ;;  %v289_v2 = vmul.f32 0.9, %v161_v59 }
  0xff   :  { %v165_v3 = vsel %vm163_vm7, 1.0, %v851_v0  ;;  %vm442_vm7 = vmor %vm440_vm0, %vm441_vm3 }
 0x100   :  { %175 = vst.msk [vmem:[%s1116_s3] sm:$0xf] %vm174_vm6, %v690_v63  ;;  %v292_v4 = vsub.f32 %v290_v1, %v164_v62  ;;  %v691_v5 = vpack.c.bf16 %v165_v3, %v165_v3  ;;  %v291_v6 = vadd.f32 %v289_v2, %v285_v61 }
 0x102   :  { %316 = vst.msk [vmem:[%s1115_s4 + $0xa] sm:$0xff] %vm21_vm1, %v292_v4  ;;  %v293_v7 = vsub.f32 %v291_v6, %v165_v3  ;;  %vm294_vm9 = vcmp.gt.f32.partialorder %v292_v4, 1.0  ;;  %v424_v18 = vmul.f32 0.9, %v292_v4 }
 0x103   :  { %177 = vst.msk [vmem:[%s1116_s3 + $0x4] sm:$0x1] %vm176_vm8, %v691_v5  ;;  %v296_v8 = vsel %vm294_vm9, 1.0, %v851_v0  ;;  %vm451_vm8 = vcmask 10240  }
 0x104   :  { %317 = vst.msk [vmem:[%s1115_s4 + $0x12] sm:$0x3] %vm23_vm2, %v293_v7  ;;  %v692_v9 = vpack.c.bf16 %v296_v8, %v296_v8  ;;  %vm295_vm10 = vcmp.gt.f32.partialorder %v293_v7, 1.0  ;;  %v425_v25 = vmul.f32 0.9, %v293_v7 }
 0x105   :  { %v297_v10 = vsel %vm295_vm10, 1.0, %v851_v0  ;;  %vm577_vm10 = vcmask 1042432  }
 0x106   :  { %v307_v11 = vrot.slane %v692_v9, 7  ;;  %v693_v12 = vpack.c.bf16 %v297_v10, %v297_v10 }
 0x108   :  { %v308_v13 = vrot.slane %v307_v11, 4  ;;  %314 = vst.msk [vmem:[%s1116_s3 + $0x4] sm:$0xe] %vm313_vm13, %v307_v11  ;;  %v309_v14 = vrot.slane %v693_v12, 7  ;;  %vm586_vm13 = vcmask 11267  }
 0x10a   :  { %v310_v15 = vsel %vm306_vm14, %v308_v13, %v309_v14 }
 0x10b   :  { %315 = vst.msk [vmem:[%s1116_s3 + $0x8] sm:$0x3] %vm23_vm2, %v310_v15 }
 0x115   :  { %v417_v16 = vpop.f32.mrb[4].mxu0 }
 0x116   :  { %v418_v17 = vadd.f32 %v417_v16, %v1028_v37  ;;  %v554_v19 = vpop.f32.mrb[4].mxu1  ;;  %v792_v20 = vpop.f32.mrb[5].mxu0 }
 0x117   :  { %v812_v21 = vpop.f32.mrb[5].mxu1  ;;  %v420_v22 = vpop.f32.mrb[6].mxu0  ;;  %v555_v31 = vadd.f32 %v554_v19, %v1028_v37 }
 0x118   :  { %v426_v23 = vadd.f32 %v424_v18, %v418_v17  ;;  %v421_v24 = vadd.f32 %v420_v22, %v1030_v42  ;;  %v557_v26 = vpop.f32.mrb[6].mxu1  ;;  %v793_v27 = vpop.f32.mrb[7].mxu0 }
 0x119   :  { %v813_v28 = vpop.f32.mrb[7].mxu1  ;;  %v558_v35 = vadd.f32 %v557_v26, %v1030_v42 }
 0x11a   :  { %v428_v29 = vsub.f32 %v426_v23, %v296_v8  ;;  %v427_v30 = vadd.f32 %v425_v25, %v421_v24 }
 0x11c   :  { %453 = vst.msk [vmem:[%s1115_s4 + $0x14] sm:$0xff] %vm21_vm1, %v428_v29  ;;  %vm430_vm15 = vcmp.gt.f32.partialorder %v428_v29, 1.0  ;;  %v561_v32 = vmul.f32 0.9, %v428_v29  ;;  %v429_v33 = vsub.f32 %v427_v30, %v297_v10 }
 0x11d   :  { %v432_v34 = vsel %vm430_vm15, 1.0, %v851_v0 }
 0x11e   :  { %v694_v36 = vpack.c.bf16 %v432_v34, %v432_v34  ;;  %v563_v38 = vadd.f32 %v561_v32, %v555_v31  ;;  %454 = vst.msk [vmem:[%s1115_s4 + $0x1c] sm:$0x3] %vm23_vm2, %v429_v33  ;;  %vm431_vm4 = vcmp.gt.f32.partialorder %v429_v33, 1.0  ;;  %v562_v39 = vmul.f32 0.9, %v429_v33 }
 0x11f   :  { %v433_v37 = vsel %vm431_vm4, 1.0, %v851_v0 }
 0x120   :  { %v443_v40 = vrot.slane %v694_v36, 6  ;;  %v565_v41 = vsub.f32 %v563_v38, %v432_v34  ;;  %v695_v43 = vpack.c.bf16 %v433_v37, %v433_v37  ;;  %v564_v44 = vadd.f32 %v562_v39, %v558_v35 }
 0x122   :  { %v444_v45 = vrot.slane %v443_v40, 4  ;;  %450 = vst.msk [vmem:[%s1116_s3 + $0x8] sm:$0xc] %vm449_vm5, %v443_v40  ;;  %vm567_vm9 = vcmp.gt.f32.partialorder %v565_v41, 1.0  ;;  %v445_v42 = vrot.slane %v695_v43, 6  ;;  %v566_v46 = vsub.f32 %v564_v44, %v433_v37 }
 0x123   :  { %589 = vst.msk [vmem:[%s1115_s4 + $0x1e] sm:$0xff] %vm21_vm1, %v565_v41  ;;  %591 = vst.msk [vmem:[#allocation2] sm:$0xff] %vm21_vm1, %v565_v41  ;;  %v569_v47 = vsel %vm567_vm9, 1.0, %v851_v0 }
 0x124   :  { %v696_v48 = vpack.c.bf16 %v569_v47, %v569_v47  ;;  %v446_v49 = vsel %vm442_vm7, %v444_v45, %v445_v42  ;;  %vm568_vm11 = vcmp.gt.f32.partialorder %v566_v46, 1.0  ;;  %590 = vst.msk [vmem:[%s1115_s4 + $0x26] sm:$0x3] %vm23_vm2, %v566_v46  ;;  %592 = vst.msk [vmem:[#allocation2 + $0x8] sm:$0x3] %vm23_vm2, %v566_v46 }
 0x125   :  { %452 = vst.msk [vmem:[%s1116_s3 + $0xc] sm:$0x7] %vm451_vm8, %v446_v49  ;;  %v570_v50 = vsel %vm568_vm11, 1.0, %v851_v0  ;;  %vm579_vm1 = vmor %vm577_vm10, %vm578_vm12 }
 0x126   :  { %v580_v51 = vrot.slane %v696_v48, 5  ;;  %v697_v52 = vpack.c.bf16 %v570_v50, %v570_v50 }
 0x128   :  { %v581_v53 = vrot.slane %v580_v51, 4  ;;  %587 = vst.msk [vmem:[%s1116_s3 + $0xc] sm:$0x8] %vm586_vm13, %v580_v51  ;;  %v582_v54 = vrot.slane %v697_v52, 5 }
 0x12a   :  { %v583_v55 = vsel %vm579_vm1, %v581_v53, %v582_v54 }
 0x12b   :  { %588 = vst.msk [vmem:[%s1116_s3 + $0x10] sm:$0xf] %vm174_vm6, %v583_v55 }

</bundles_post_ra>
